<compile_context>
chip_gen: v7x
topology: tpu7x:2x2x1
jax: 0.10.0
libtpu: 0.0.40
codegen_flags: <defaults>
</compile_context>

<pallas_src>
import jax
import jax.numpy as jnp
from jax.experimental import pallas as pl
from jax.experimental.pallas import tpu as pltpu


# ----------------------------------------------------------------------------
# Kernel: one timestep for one row tile.  Weights are VMEM-resident across the
# whole grid; hidden state is carried in the hh output block across the time
# axis (output "revisiting" / accumulator pattern).
# ----------------------------------------------------------------------------
def dwn_rnn_step_kernel(
    x_ref, h0_ref,                                   # (1,TN,IN_p) f32, (TN,H_p) f32
    wdx_ref, wdh_ref, bd_ref,                        # world-model surrogate
    w1s_ref, w1x_ref, b1_ref,                        # fc1 (split: state / input)
    wir_ref, wiz_ref, win_ref,                       # GRU input->gate (r, z, n)
    whr_ref, whz_ref, whn_ref,                       # GRU hidden->gate (r, z, n)
    br_ref, bz_ref, bin_ref, bhn_ref,                # GRU biases (r/z folded)
    w2_ref, b2_ref,                                  # fc2
    q_ref, hh_ref,                                   # outputs
):
    t = pl.program_id(1)
    f32 = jnp.float32

    # At the first timestep of each row tile, seed the carried hidden state.
    @pl.when(t == 0)
    def _():
        hh_ref[...] = h0_ref[...]

    x = x_ref[0]                          # (TN, IN_pad) f32
    h = hh_ref[...]                       # (TN, H_pad)  f32  (carried)
    xb = x.astype(jnp.bfloat16)
    hb = h.astype(jnp.bfloat16)

    # ---- Diffusion_WorldModel surrogate: pred_stat = Linear(cat([x, h])) ----
    pred = (jnp.dot(xb, wdx_ref[...], preferred_element_type=f32)
            + jnp.dot(hb, wdh_ref[...], preferred_element_type=f32)
            + bd_ref[...])

    # ---- fc1 on cat([pred_stat, inputs]) followed by ReLU ----
    z1 = (jnp.dot(pred.astype(jnp.bfloat16), w1s_ref[...], preferred_element_type=f32)
          + jnp.dot(xb, w1x_ref[...], preferred_element_type=f32)
          + b1_ref[...])
    xr = jnp.maximum(z1, 0.0)
    xrb = xr.astype(jnp.bfloat16)

    # ---- GRUCell (PyTorch semantics), gates as separate lane-aligned dots ----
    r = jax.nn.sigmoid(jnp.dot(xrb, wir_ref[...], preferred_element_type=f32)
                       + jnp.dot(hb, whr_ref[...], preferred_element_type=f32)
                       + br_ref[...])
    zg = jax.nn.sigmoid(jnp.dot(xrb, wiz_ref[...], preferred_element_type=f32)
                        + jnp.dot(hb, whz_ref[...], preferred_element_type=f32)
                        + bz_ref[...])
    n = jnp.tanh(jnp.dot(xrb, win_ref[...], preferred_element_type=f32)
                 + bin_ref[...]
                 + r * (jnp.dot(hb, whn_ref[...], preferred_element_type=f32)
                        + bhn_ref[...]))
    hh = (1.0 - zg) * n + zg * h

    # ---- fc2 ----
    q = (jnp.dot(hh.astype(jnp.bfloat16), w2_ref[...], preferred_element_type=f32)
         + b2_ref[...])

    q_ref[0] = q.astype(q_ref.dtype)
    hh_ref[...] = hh.astype(hh_ref.dtype)


# ----------------------------------------------------------------------------
# Wrappers
# ----------------------------------------------------------------------------
def _round_up(v, m):
    return (v + m - 1) // m * m


def prepare_params(params):
    """Pad features to multiples of 128, split GRU gates, cast matmul weights
    to bf16 (biases stay f32).  Returns {'params': ..., 'dims': ...}."""
    in_dim, S = params["wd_x"].shape
    H = params["w1_s"].shape[1]
    A = params["w2"].shape[1]
    IN_p, S_p, H_p, A_p = (_round_up(d, 128) for d in (in_dim, S, H, A))

    def pw(m, r, c):   # padded weight, bf16
        return jnp.pad(m, ((0, r - m.shape[0]), (0, c - m.shape[1]))).astype(jnp.bfloat16)

    def pb(v, c):      # padded bias, f32, shape (1, c)
        return jnp.pad(v, ((0, 0), (0, c - v.shape[1]))).astype(jnp.float32)

    w_ih, w_hh = params["w_ih"], params["w_hh"]
    b_ih, b_hh = params["b_ih"], params["b_hh"]

    p = {
        "wd_x": pw(params["wd_x"], IN_p, S_p),
        "wd_h": pw(params["wd_h"], H_p, S_p),
        "bd":   pb(params["bd"], S_p),
        "w1_s": pw(params["w1_s"], S_p, H_p),
        "w1_x": pw(params["w1_x"], IN_p, H_p),
        "b1":   pb(params["b1"], H_p),
        "w_ir": pw(w_ih[:, 0:H],     H_p, H_p),
        "w_iz": pw(w_ih[:, H:2 * H], H_p, H_p),
        "w_in": pw(w_ih[:, 2 * H:],  H_p, H_p),
        "w_hr": pw(w_hh[:, 0:H],     H_p, H_p),
        "w_hz": pw(w_hh[:, H:2 * H], H_p, H_p),
        "w_hn": pw(w_hh[:, 2 * H:],  H_p, H_p),
        # r/z biases folded; n-gate biases must stay separate.
        "b_r":  pb(b_ih[:, 0:H] + b_hh[:, 0:H], H_p),
        "b_z":  pb(b_ih[:, H:2 * H] + b_hh[:, H:2 * H], H_p),
        "b_in": pb(b_ih[:, 2 * H:], H_p),
        "b_hn": pb(b_hh[:, 2 * H:], H_p),
        "w2":   pw(params["w2"], H_p, A_p),
        "b2":   pb(params["b2"], A_p),
    }
    dims = dict(in_dim=in_dim, S=S, H=H, A=A,
                IN_p=IN_p, S_p=S_p, H_p=H_p, A_p=A_p)
    return {"params": p, "dims": dims}


def dwn_rnn_agent_rollout(inputs_seq, hidden_state, prep):
    """Fused multi-step forward.  inputs_seq: (T, b, a, in_dim);
    hidden_state: (b*a, H) or (b, a, H).  Returns q_seq (T,b,a,A), hh (b,a,H)."""
    p, d = prep["params"], prep["dims"]
    T, b, a, in_dim = inputs_seq.shape
    N = b * a
    H, A = d["H"], d["A"]
    IN_p, H_p, A_p = d["IN_p"], d["H_p"], d["A_p"]

    # Row tiling: 128 rows per tile when batch is large, minimal 8-row padding
    # otherwise (last-two-dims of every block stay (8,128)-aligned).
    tile_n = 128 if N >= 128 else _round_up(N, 8)
    N_pad = _round_up(N, tile_n)

    x = inputs_seq.reshape(T, N, in_dim).astype(jnp.float32)
    x = jnp.pad(x, ((0, 0), (0, N_pad - N), (0, IN_p - in_dim)))
    h0 = hidden_state.reshape(N, H).astype(jnp.float32)
    h0 = jnp.pad(h0, ((0, N_pad - N), (0, H_p - H)))

    weight_args = (p["wd_x"], p["wd_h"], p["bd"],
                   p["w1_s"], p["w1_x"], p["b1"],
                   p["w_ir"], p["w_iz"], p["w_in"],
                   p["w_hr"], p["w_hz"], p["w_hn"],
                   p["b_r"], p["b_z"], p["b_in"], p["b_hn"],
                   p["w2"], p["b2"])

    def w_spec(arr):   # full-array block, fetched once (index never changes)
        return pl.BlockSpec(arr.shape, lambda i, t: (0, 0))

    in_specs = (
        [pl.BlockSpec((1, tile_n, IN_p), lambda i, t: (t, i, 0)),   # x (per step)
         pl.BlockSpec((tile_n, H_p), lambda i, t: (i, 0))]          # h0 (per tile)
        + [w_spec(w) for w in weight_args]
    )
    out_specs = (
        pl.BlockSpec((1, tile_n, A_p), lambda i, t: (t, i, 0)),     # q per step
        pl.BlockSpec((tile_n, H_p), lambda i, t: (i, 0)),           # hh carried
    )
    out_shape = (
        jax.ShapeDtypeStruct((T, N_pad, A_p), jnp.float32),
        jax.ShapeDtypeStruct((N_pad, H_p), jnp.float32),
    )

    q_pad, hh_pad = pl.pallas_call(
        dwn_rnn_step_kernel,
        grid=(N_pad // tile_n, T),
        in_specs=in_specs,
        out_specs=out_specs,
        out_shape=out_shape,
        input_output_aliases={1: 1},   # h0 buffer -> hh buffer (P8)
        compiler_params=pltpu.CompilerParams(
            dimension_semantics=("parallel", "arbitrary")),
    )(x, h0, *weight_args)

    q = q_pad[:, :N, :A].reshape(T, b, a, A)
    hh = hh_pad[:N, :H].reshape(b, a, H)
    return q, hh


def dwn_rnn_agent_forward(inputs, hidden_state, prep):
    """Single-step forward matching DWN_RNN_Agent.forward semantics."""
    q_seq, hh = dwn_rnn_agent_rollout(inputs[None], hidden_state, prep)
    return q_seq[0], hh


# ----------------------------------------------------------------------------
# Pure-JAX reference (same bf16-operand / f32-accumulate math)
# ----------------------------------------------------------------------------
def _reference_step(x, h, params):
    bf = lambda m: m.astype(jnp.bfloat16)
    dot = lambda u, w: jnp.dot(bf(u), bf(w), preferred_element_type=jnp.float32)
    H = h.shape[-1]
    pred = dot(x, params["wd_x"]) + dot(h, params["wd_h"]) + params["bd"]
    xr = jnp.maximum(dot(pred, params["w1_s"]) + dot(x, params["w1_x"]) + params["b1"], 0.0)
    gi = dot(xr, params["w_ih"]) + params["b_ih"]
    gh = dot(h, params["w_hh"]) + params["b_hh"]
    i_r, i_z, i_n = gi[:, :H], gi[:, H:2 * H], gi[:, 2 * H:]
    h_r, h_z, h_n = gh[:, :H], gh[:, H:2 * H], gh[:, 2 * H:]
    r = jax.nn.sigmoid(i_r + h_r)
    z = jax.nn.sigmoid(i_z + h_z)
    n = jnp.tanh(i_n + r * h_n)
    hh = (1.0 - z) * n + z * h
    q = dot(hh, params["w2"]) + params["b2"]
    return q, hh


def _reference_forward(inputs, hidden_state, params):
    b, a, in_dim = inputs.shape
    H = params["w1_s"].shape[1]
    q, hh = _reference_step(inputs.reshape(b * a, in_dim),
                            hidden_state.reshape(b * a, H), params)
    return q.reshape(b, a, -1), hh.reshape(b, a, -1)


def _reference_rollout(inputs_seq, hidden_state, params):
    T, b, a, in_dim = inputs_seq.shape
    H = params["w1_s"].shape[1]
    h = hidden_state.reshape(b * a, H)
    qs = []
    for t in range(T):
        q, h = _reference_step(inputs_seq[t].reshape(b * a, in_dim), h, params)
        qs.append(q.reshape(b, a, -1))
    return jnp.stack(qs, 0), h.reshape(b, a, H)


# ----------------------------------------------------------------------------
# Parameter construction (weights stored (in, out); GRU gate order [r, z, n])
# ----------------------------------------------------------------------------
def make_params(key, in_dim, state_dim, hidden_dim, n_actions):
    ks = jax.random.split(key, 12)
    s = 0.1
    return {
        # world-model stand-in: (in_dim + H) -> state_dim, split
        "wd_x": s * jax.random.normal(ks[0], (in_dim, state_dim), jnp.float32),
        "wd_h": s * jax.random.normal(ks[1], (hidden_dim, state_dim), jnp.float32),
        "bd":   s * jax.random.normal(ks[2], (1, state_dim), jnp.float32),
        # fc1: (state_dim + in_dim) -> H, split
        "w1_s": s * jax.random.normal(ks[3], (state_dim, hidden_dim), jnp.float32),
        "w1_x": s * jax.random.normal(ks[4], (in_dim, hidden_dim), jnp.float32),
        "b1":   s * jax.random.normal(ks[5], (1, hidden_dim), jnp.float32),
        # GRUCell: H -> 3H  (gate order [r, z, n], stored as (in, 3H))
        "w_ih": s * jax.random.normal(ks[6], (hidden_dim, 3 * hidden_dim), jnp.float32),
        "w_hh": s * jax.random.normal(ks[7], (hidden_dim, 3 * hidden_dim), jnp.float32),
        "b_ih": s * jax.random.normal(ks[8], (1, 3 * hidden_dim), jnp.float32),
        "b_hh": s * jax.random.normal(ks[9], (1, 3 * hidden_dim), jnp.float32),
        # fc2: H -> n_actions
        "w2":   s * jax.random.normal(ks[10], (hidden_dim, n_actions), jnp.float32),
        "b2":   s * jax.random.normal(ks[11], (1, n_actions), jnp.float32),
    }


if __name__ == "__main__":
    # small, module-consistent shapes
    b, a = 2, 4                 # batch, agents
    in_dim = 16                 # input_shape
    state_dim = 12              # args.state_shape
    hidden_dim = 32             # args.rnn_hidden_dim
    n_actions = 8               # args.n_actions
    T = 8                       # rollout length for the fused-time test

    key = jax.random.PRNGKey(0)
    k_in, k_h, k_p, k_seq = jax.random.split(key, 4)
    inputs = jax.random.normal(k_in, (b, a, in_dim), jnp.float32)
    hidden = jax.random.normal(k_h, (b * a, hidden_dim), jnp.float32)
    params = make_params(k_p, in_dim, state_dim, hidden_dim, n_actions)
    prep = prepare_params(params)

    # ---- single-step forward (module semantics) ----
    q, hh = dwn_rnn_agent_forward(inputs, hidden, prep)
    q = jax.block_until_ready(q)
    hh = jax.block_until_ready(hh)
    q_ref, hh_ref = _reference_forward(inputs, hidden, params)
    assert q.shape == (b, a, n_actions) and hh.shape == (b, a, hidden_dim)
    assert jnp.allclose(q, q_ref, atol=1e-3, rtol=1e-3)
    assert jnp.allclose(hh, hh_ref, atol=1e-3, rtol=1e-3)

    # ---- fused multi-step rollout (time loop inside the kernel grid) ----
    inputs_seq = jax.random.normal(k_seq, (T, b, a, in_dim), jnp.float32)
    q_seq, hh_T = dwn_rnn_agent_rollout(inputs_seq, hidden, prep)
    q_seq = jax.block_until_ready(q_seq)
    hh_T = jax.block_until_ready(hh_T)
    q_seq_ref, hh_T_ref = _reference_rollout(inputs_seq, hidden, params)
    assert jnp.allclose(q_seq, q_seq_ref, atol=1e-3, rtol=1e-3)
    assert jnp.allclose(hh_T, hh_T_ref, atol=1e-3, rtol=1e-3)

    print("KERNEL_OK")
</pallas_src>

<mosaic_0001>
module attributes {stable_mosaic.version = 11 : i64} {
  func.func @dwn_rnn_step_kernel(%arg0: i32, %arg1: i32, %arg2: memref<1x8x128xf32, #tpu.memory_space<vmem>>, %arg3: memref<8x128xf32, #tpu.memory_space<vmem>>, %arg4: memref<128x128xbf16, #tpu.memory_space<vmem>>, %arg5: memref<128x128xbf16, #tpu.memory_space<vmem>>, %arg6: memref<1x128xf32, #tpu.memory_space<vmem>>, %arg7: memref<128x128xbf16, #tpu.memory_space<vmem>>, %arg8: memref<128x128xbf16, #tpu.memory_space<vmem>>, %arg9: memref<1x128xf32, #tpu.memory_space<vmem>>, %arg10: memref<128x128xbf16, #tpu.memory_space<vmem>>, %arg11: memref<128x128xbf16, #tpu.memory_space<vmem>>, %arg12: memref<128x128xbf16, #tpu.memory_space<vmem>>, %arg13: memref<128x128xbf16, #tpu.memory_space<vmem>>, %arg14: memref<128x128xbf16, #tpu.memory_space<vmem>>, %arg15: memref<128x128xbf16, #tpu.memory_space<vmem>>, %arg16: memref<1x128xf32, #tpu.memory_space<vmem>>, %arg17: memref<1x128xf32, #tpu.memory_space<vmem>>, %arg18: memref<1x128xf32, #tpu.memory_space<vmem>>, %arg19: memref<1x128xf32, #tpu.memory_space<vmem>>, %arg20: memref<128x128xbf16, #tpu.memory_space<vmem>>, %arg21: memref<1x128xf32, #tpu.memory_space<vmem>>, %arg22: memref<1x8x128xf32, #tpu.memory_space<vmem>>, %arg23: memref<8x128xf32, #tpu.memory_space<vmem>>) attributes {dimension_semantics = [#tpu.dimension_semantics<parallel>, #tpu.dimension_semantics<arbitrary>], iteration_bounds = array<i64: 1, 1>, scalar_prefetch = 0 : i64, scratch_operands = 0 : i64, tpu.core_type = #tpu.core_type<tc>, window_params = [{transform_indices = @transform_0, window_bounds = array<i64: 1, 8, 128>}, {transform_indices = @transform_1, window_bounds = array<i64: 8, 128>}, {pipeline_mode = #tpu.pipeline_mode<synchronous>, transform_indices = @transform_2, window_bounds = array<i64: 128, 128>}, {pipeline_mode = #tpu.pipeline_mode<synchronous>, transform_indices = @transform_3, window_bounds = array<i64: 128, 128>}, {pipeline_mode = #tpu.pipeline_mode<synchronous>, transform_indices = @transform_4, window_bounds = array<i64: 1, 128>}, {pipeline_mode = #tpu.pipeline_mode<synchronous>, transform_indices = @transform_5, window_bounds = array<i64: 128, 128>}, {pipeline_mode = #tpu.pipeline_mode<synchronous>, transform_indices = @transform_6, window_bounds = array<i64: 128, 128>}, {pipeline_mode = #tpu.pipeline_mode<synchronous>, transform_indices = @transform_7, window_bounds = array<i64: 1, 128>}, {pipeline_mode = #tpu.pipeline_mode<synchronous>, transform_indices = @transform_8, window_bounds = array<i64: 128, 128>}, {pipeline_mode = #tpu.pipeline_mode<synchronous>, transform_indices = @transform_9, window_bounds = array<i64: 128, 128>}, {pipeline_mode = #tpu.pipeline_mode<synchronous>, transform_indices = @transform_10, window_bounds = array<i64: 128, 128>}, {pipeline_mode = #tpu.pipeline_mode<synchronous>, transform_indices = @transform_11, window_bounds = array<i64: 128, 128>}, {pipeline_mode = #tpu.pipeline_mode<synchronous>, transform_indices = @transform_12, window_bounds = array<i64: 128, 128>}, {pipeline_mode = #tpu.pipeline_mode<synchronous>, transform_indices = @transform_13, window_bounds = array<i64: 128, 128>}, {pipeline_mode = #tpu.pipeline_mode<synchronous>, transform_indices = @transform_14, window_bounds = array<i64: 1, 128>}, {pipeline_mode = #tpu.pipeline_mode<synchronous>, transform_indices = @transform_15, window_bounds = array<i64: 1, 128>}, {pipeline_mode = #tpu.pipeline_mode<synchronous>, transform_indices = @transform_16, window_bounds = array<i64: 1, 128>}, {pipeline_mode = #tpu.pipeline_mode<synchronous>, transform_indices = @transform_17, window_bounds = array<i64: 1, 128>}, {pipeline_mode = #tpu.pipeline_mode<synchronous>, transform_indices = @transform_18, window_bounds = array<i64: 128, 128>}, {pipeline_mode = #tpu.pipeline_mode<synchronous>, transform_indices = @transform_19, window_bounds = array<i64: 1, 128>}, {transform_indices = @transform_20, window_bounds = array<i64: 1, 8, 128>}, {transform_indices = @transform_21, window_bounds = array<i64: 8, 128>}]} {
    %c0_i32 = arith.constant 0 : i32
    %0 = arith.cmpi eq, %arg1, %c0_i32 : i32
    %1 = arith.extui %0 : i1 to i32
    %c0_i32_0 = arith.constant 0 : i32
    %2 = arith.cmpi ne, %1, %c0_i32_0 : i32
    scf.if %2 {
      %c0_60 = arith.constant 0 : index
      %c0_61 = arith.constant 0 : index
      %82 = vector.load %arg3[%c0_60, %c0_61] : memref<8x128xf32, #tpu.memory_space<vmem>>, vector<8x128xf32>
      %c0_62 = arith.constant 0 : index
      %c0_63 = arith.constant 0 : index
      %83 = vector.load %arg23[%c0_62, %c0_63] : memref<8x128xf32, #tpu.memory_space<vmem>>, vector<8x128xf32>
      tpu.vector_store %arg23[%c0_62, %c0_63], %82 {strides = array<i32>} : memref<8x128xf32, #tpu.memory_space<vmem>>, vector<8x128xf32>,
    } else {
    }
    %c0 = arith.constant 0 : index
    %c0_1 = arith.constant 0 : index
    %c0_2 = arith.constant 0 : index
    %3 = vector.load %arg2[%c0, %c0_1, %c0_2] : memref<1x8x128xf32, #tpu.memory_space<vmem>>, vector<1x8x128xf32>
    %4 = vector.shape_cast %3 : vector<1x8x128xf32> to vector<8x128xf32>
    %c0_3 = arith.constant 0 : index
    %c0_4 = arith.constant 0 : index
    %5 = vector.load %arg23[%c0_3, %c0_4] : memref<8x128xf32, #tpu.memory_space<vmem>>, vector<8x128xf32>
    %6 = arith.truncf %4 : vector<8x128xf32> to vector<8x128xbf16>
    %7 = arith.truncf %5 : vector<8x128xf32> to vector<8x128xbf16>
    %c0_5 = arith.constant 0 : index
    %c0_6 = arith.constant 0 : index
    %8 = vector.load %arg4[%c0_5, %c0_6] : memref<128x128xbf16, #tpu.memory_space<vmem>>, vector<128x128xbf16>
    %cst = arith.constant dense<0.000000e+00> : vector<8x128xf32>
    %9 = tpu.matmul %6, %8, %cst {dimension_numbers = #tpu.dot_dimension_numbers<[1], [0], [0], [1], [0, 0, 1, 1], [], []>} : vector<8x128xbf16>, vector<128x128xbf16>, vector<8x128xf32> -> vector<8x128xf32>
    %c0_7 = arith.constant 0 : index
    %c0_8 = arith.constant 0 : index
    %10 = vector.load %arg5[%c0_7, %c0_8] : memref<128x128xbf16, #tpu.memory_space<vmem>>, vector<128x128xbf16>
    %cst_9 = arith.constant dense<0.000000e+00> : vector<8x128xf32>
    %11 = tpu.matmul %7, %10, %cst_9 {dimension_numbers = #tpu.dot_dimension_numbers<[1], [0], [0], [1], [0, 0, 1, 1], [], []>} : vector<8x128xbf16>, vector<128x128xbf16>, vector<8x128xf32> -> vector<8x128xf32>
    %12 = arith.addf %9, %11 : vector<8x128xf32>
    %c0_10 = arith.constant 0 : index
    %c0_11 = arith.constant 0 : index
    %13 = vector.load %arg6[%c0_10, %c0_11] : memref<1x128xf32, #tpu.memory_space<vmem>>, vector<1x128xf32>
    %14 = vector.broadcast %13 : vector<1x128xf32> to vector<8x128xf32>
    %15 = arith.addf %12, %14 : vector<8x128xf32>
    %16 = arith.truncf %15 : vector<8x128xf32> to vector<8x128xbf16>
    %c0_12 = arith.constant 0 : index
    %c0_13 = arith.constant 0 : index
    %17 = vector.load %arg7[%c0_12, %c0_13] : memref<128x128xbf16, #tpu.memory_space<vmem>>, vector<128x128xbf16>
    %cst_14 = arith.constant dense<0.000000e+00> : vector<8x128xf32>
    %18 = tpu.matmul %16, %17, %cst_14 {dimension_numbers = #tpu.dot_dimension_numbers<[1], [0], [0], [1], [0, 0, 1, 1], [], []>} : vector<8x128xbf16>, vector<128x128xbf16>, vector<8x128xf32> -> vector<8x128xf32>
    %c0_15 = arith.constant 0 : index
    %c0_16 = arith.constant 0 : index
    %19 = vector.load %arg8[%c0_15, %c0_16] : memref<128x128xbf16, #tpu.memory_space<vmem>>, vector<128x128xbf16>
    %cst_17 = arith.constant dense<0.000000e+00> : vector<8x128xf32>
    %20 = tpu.matmul %6, %19, %cst_17 {dimension_numbers = #tpu.dot_dimension_numbers<[1], [0], [0], [1], [0, 0, 1, 1], [], []>} : vector<8x128xbf16>, vector<128x128xbf16>, vector<8x128xf32> -> vector<8x128xf32>
    %21 = arith.addf %18, %20 : vector<8x128xf32>
    %c0_18 = arith.constant 0 : index
    %c0_19 = arith.constant 0 : index
    %22 = vector.load %arg9[%c0_18, %c0_19] : memref<1x128xf32, #tpu.memory_space<vmem>>, vector<1x128xf32>
    %23 = vector.broadcast %22 : vector<1x128xf32> to vector<8x128xf32>
    %24 = arith.addf %21, %23 : vector<8x128xf32>
    %cst_20 = arith.constant 0.000000e+00 : f32
    %25 = vector.broadcast %cst_20 : f32 to vector<8x128xf32>
    %26 = arith.maximumf %24, %25 : vector<8x128xf32>
    %27 = arith.truncf %26 : vector<8x128xf32> to vector<8x128xbf16>
    %c0_21 = arith.constant 0 : index
    %c0_22 = arith.constant 0 : index
    %28 = vector.load %arg10[%c0_21, %c0_22] : memref<128x128xbf16, #tpu.memory_space<vmem>>, vector<128x128xbf16>
    %cst_23 = arith.constant dense<0.000000e+00> : vector<8x128xf32>
    %29 = tpu.matmul %27, %28, %cst_23 {dimension_numbers = #tpu.dot_dimension_numbers<[1], [0], [0], [1], [0, 0, 1, 1], [], []>} : vector<8x128xbf16>, vector<128x128xbf16>, vector<8x128xf32> -> vector<8x128xf32>
    %c0_24 = arith.constant 0 : index
    %c0_25 = arith.constant 0 : index
    %30 = vector.load %arg13[%c0_24, %c0_25] : memref<128x128xbf16, #tpu.memory_space<vmem>>, vector<128x128xbf16>
    %cst_26 = arith.constant dense<0.000000e+00> : vector<8x128xf32>
    %31 = tpu.matmul %7, %30, %cst_26 {dimension_numbers = #tpu.dot_dimension_numbers<[1], [0], [0], [1], [0, 0, 1, 1], [], []>} : vector<8x128xbf16>, vector<128x128xbf16>, vector<8x128xf32> -> vector<8x128xf32>
    %32 = arith.addf %29, %31 : vector<8x128xf32>
    %c0_27 = arith.constant 0 : index
    %c0_28 = arith.constant 0 : index
    %33 = vector.load %arg16[%c0_27, %c0_28] : memref<1x128xf32, #tpu.memory_space<vmem>>, vector<1x128xf32>
    %34 = vector.broadcast %33 : vector<1x128xf32> to vector<8x128xf32>
    %35 = arith.addf %32, %34 : vector<8x128xf32>
    %36 = arith.negf %35 : vector<8x128xf32>
    %37 = math.exp %36 : vector<8x128xf32>
    %cst_29 = arith.constant 1.000000e+00 : f32
    %38 = vector.broadcast %cst_29 : f32 to vector<8x128xf32>
    %39 = arith.addf %38, %37 : vector<8x128xf32>
    %40 = arith.divf %38, %39 : vector<8x128xf32>
    %c0_30 = arith.constant 0 : index
    %c0_31 = arith.constant 0 : index
    %41 = vector.load %arg11[%c0_30, %c0_31] : memref<128x128xbf16, #tpu.memory_space<vmem>>, vector<128x128xbf16>
    %cst_32 = arith.constant dense<0.000000e+00> : vector<8x128xf32>
    %42 = tpu.matmul %27, %41, %cst_32 {dimension_numbers = #tpu.dot_dimension_numbers<[1], [0], [0], [1], [0, 0, 1, 1], [], []>} : vector<8x128xbf16>, vector<128x128xbf16>, vector<8x128xf32> -> vector<8x128xf32>
    %c0_33 = arith.constant 0 : index
    %c0_34 = arith.constant 0 : index
    %43 = vector.load %arg14[%c0_33, %c0_34] : memref<128x128xbf16, #tpu.memory_space<vmem>>, vector<128x128xbf16>
    %cst_35 = arith.constant dense<0.000000e+00> : vector<8x128xf32>
    %44 = tpu.matmul %7, %43, %cst_35 {dimension_numbers = #tpu.dot_dimension_numbers<[1], [0], [0], [1], [0, 0, 1, 1], [], []>} : vector<8x128xbf16>, vector<128x128xbf16>, vector<8x128xf32> -> vector<8x128xf32>
    %45 = arith.addf %42, %44 : vector<8x128xf32>
    %c0_36 = arith.constant 0 : index
    %c0_37 = arith.constant 0 : index
    %46 = vector.load %arg17[%c0_36, %c0_37] : memref<1x128xf32, #tpu.memory_space<vmem>>, vector<1x128xf32>
    %47 = vector.broadcast %46 : vector<1x128xf32> to vector<8x128xf32>
    %48 = arith.addf %45, %47 : vector<8x128xf32>
    %49 = arith.negf %48 : vector<8x128xf32>
    %50 = math.exp %49 : vector<8x128xf32>
    %cst_38 = arith.constant 1.000000e+00 : f32
    %51 = vector.broadcast %cst_38 : f32 to vector<8x128xf32>
    %52 = arith.addf %51, %50 : vector<8x128xf32>
    %53 = arith.divf %51, %52 : vector<8x128xf32>
    %c0_39 = arith.constant 0 : index
    %c0_40 = arith.constant 0 : index
    %54 = vector.load %arg12[%c0_39, %c0_40] : memref<128x128xbf16, #tpu.memory_space<vmem>>, vector<128x128xbf16>
    %cst_41 = arith.constant dense<0.000000e+00> : vector<8x128xf32>
    %55 = tpu.matmul %27, %54, %cst_41 {dimension_numbers = #tpu.dot_dimension_numbers<[1], [0], [0], [1], [0, 0, 1, 1], [], []>} : vector<8x128xbf16>, vector<128x128xbf16>, vector<8x128xf32> -> vector<8x128xf32>
    %c0_42 = arith.constant 0 : index
    %c0_43 = arith.constant 0 : index
    %56 = vector.load %arg18[%c0_42, %c0_43] : memref<1x128xf32, #tpu.memory_space<vmem>>, vector<1x128xf32>
    %57 = vector.broadcast %56 : vector<1x128xf32> to vector<8x128xf32>
    %58 = arith.addf %55, %57 : vector<8x128xf32>
    %c0_44 = arith.constant 0 : index
    %c0_45 = arith.constant 0 : index
    %59 = vector.load %arg15[%c0_44, %c0_45] : memref<128x128xbf16, #tpu.memory_space<vmem>>, vector<128x128xbf16>
    %cst_46 = arith.constant dense<0.000000e+00> : vector<8x128xf32>
    %60 = tpu.matmul %7, %59, %cst_46 {dimension_numbers = #tpu.dot_dimension_numbers<[1], [0], [0], [1], [0, 0, 1, 1], [], []>} : vector<8x128xbf16>, vector<128x128xbf16>, vector<8x128xf32> -> vector<8x128xf32>
    %c0_47 = arith.constant 0 : index
    %c0_48 = arith.constant 0 : index
    %61 = vector.load %arg19[%c0_47, %c0_48] : memref<1x128xf32, #tpu.memory_space<vmem>>, vector<1x128xf32>
    %62 = vector.broadcast %61 : vector<1x128xf32> to vector<8x128xf32>
    %63 = arith.addf %60, %62 : vector<8x128xf32>
    %64 = arith.mulf %40, %63 : vector<8x128xf32>
    %65 = arith.addf %58, %64 : vector<8x128xf32>
    %66 = math.tanh %65 : vector<8x128xf32>
    %cst_49 = arith.constant 1.000000e+00 : f32
    %67 = vector.broadcast %cst_49 : f32 to vector<8x128xf32>
    %68 = arith.subf %67, %53 : vector<8x128xf32>
    %69 = arith.mulf %68, %66 : vector<8x128xf32>
    %70 = arith.mulf %53, %5 : vector<8x128xf32>
    %71 = arith.addf %69, %70 : vector<8x128xf32>
    %72 = arith.truncf %71 : vector<8x128xf32> to vector<8x128xbf16>
    %c0_50 = arith.constant 0 : index
    %c0_51 = arith.constant 0 : index
    %73 = vector.load %arg20[%c0_50, %c0_51] : memref<128x128xbf16, #tpu.memory_space<vmem>>, vector<128x128xbf16>
    %cst_52 = arith.constant dense<0.000000e+00> : vector<8x128xf32>
    %74 = tpu.matmul %72, %73, %cst_52 {dimension_numbers = #tpu.dot_dimension_numbers<[1], [0], [0], [1], [0, 0, 1, 1], [], []>} : vector<8x128xbf16>, vector<128x128xbf16>, vector<8x128xf32> -> vector<8x128xf32>
    %c0_53 = arith.constant 0 : index
    %c0_54 = arith.constant 0 : index
    %75 = vector.load %arg21[%c0_53, %c0_54] : memref<1x128xf32, #tpu.memory_space<vmem>>, vector<1x128xf32>
    %76 = vector.broadcast %75 : vector<1x128xf32> to vector<8x128xf32>
    %77 = arith.addf %74, %76 : vector<8x128xf32>
    %c0_55 = arith.constant 0 : index
    %c0_56 = arith.constant 0 : index
    %c0_57 = arith.constant 0 : index
    %78 = vector.load %arg22[%c0_55, %c0_56, %c0_57] : memref<1x8x128xf32, #tpu.memory_space<vmem>>, vector<1x8x128xf32>
    %79 = vector.shape_cast %78 : vector<1x8x128xf32> to vector<8x128xf32>
    %80 = vector.shape_cast %77 : vector<8x128xf32> to vector<1x8x128xf32>
    tpu.vector_store %arg22[%c0_55, %c0_56, %c0_57], %80 {strides = array<i32>} : memref<1x8x128xf32, #tpu.memory_space<vmem>>, vector<1x8x128xf32>,
    %c0_58 = arith.constant 0 : index
    %c0_59 = arith.constant 0 : index
    %81 = vector.load %arg23[%c0_58, %c0_59] : memref<8x128xf32, #tpu.memory_space<vmem>>, vector<8x128xf32>
    tpu.vector_store %arg23[%c0_58, %c0_59], %71 {strides = array<i32>} : memref<8x128xf32, #tpu.memory_space<vmem>>, vector<8x128xf32>,
    return
  }
  func.func @transform_0(%arg0: i32, %arg1: i32) -> (i32, i32, i32) {
    %c0_i32 = arith.constant 0 : i32
    %c0_i32_0 = arith.constant 0 : i32
    return %arg1, %arg0, %c0_i32 : i32, i32, i32
  }
  func.func @transform_1(%arg0: i32, %arg1: i32) -> (i32, i32) {
    %c0_i32 = arith.constant 0 : i32
    %c0_i32_0 = arith.constant 0 : i32
    return %arg0, %c0_i32 : i32, i32
  }
  func.func @transform_2(%arg0: i32, %arg1: i32) -> (i32, i32) {
    %c0_i32 = arith.constant 0 : i32
    %c0_i32_0 = arith.constant 0 : i32
    %c0_i32_1 = arith.constant 0 : i32
    return %c0_i32, %c0_i32_0 : i32, i32
  }
  func.func @transform_3(%arg0: i32, %arg1: i32) -> (i32, i32) {
    %c0_i32 = arith.constant 0 : i32
    %c0_i32_0 = arith.constant 0 : i32
    %c0_i32_1 = arith.constant 0 : i32
    return %c0_i32, %c0_i32_0 : i32, i32
  }
  func.func @transform_4(%arg0: i32, %arg1: i32) -> (i32, i32) {
    %c0_i32 = arith.constant 0 : i32
    %c0_i32_0 = arith.constant 0 : i32
    %c0_i32_1 = arith.constant 0 : i32
    return %c0_i32, %c0_i32_0 : i32, i32
  }
  func.func @transform_5(%arg0: i32, %arg1: i32) -> (i32, i32) {
    %c0_i32 = arith.constant 0 : i32
    %c0_i32_0 = arith.constant 0 : i32
    %c0_i32_1 = arith.constant 0 : i32
    return %c0_i32, %c0_i32_0 : i32, i32
  }
  func.func @transform_6(%arg0: i32, %arg1: i32) -> (i32, i32) {
    %c0_i32 = arith.constant 0 : i32
    %c0_i32_0 = arith.constant 0 : i32
    %c0_i32_1 = arith.constant 0 : i32
    return %c0_i32, %c0_i32_0 : i32, i32
  }
  func.func @transform_7(%arg0: i32, %arg1: i32) -> (i32, i32) {
    %c0_i32 = arith.constant 0 : i32
    %c0_i32_0 = arith.constant 0 : i32
    %c0_i32_1 = arith.constant 0 : i32
    return %c0_i32, %c0_i32_0 : i32, i32
  }
  func.func @transform_8(%arg0: i32, %arg1: i32) -> (i32, i32) {
    %c0_i32 = arith.constant 0 : i32
    %c0_i32_0 = arith.constant 0 : i32
    %c0_i32_1 = arith.constant 0 : i32
    return %c0_i32, %c0_i32_0 : i32, i32
  }
  func.func @transform_9(%arg0: i32, %arg1: i32) -> (i32, i32) {
    %c0_i32 = arith.constant 0 : i32
    %c0_i32_0 = arith.constant 0 : i32
    %c0_i32_1 = arith.constant 0 : i32
    return %c0_i32, %c0_i32_0 : i32, i32
  }
  func.func @transform_10(%arg0: i32, %arg1: i32) -> (i32, i32) {
    %c0_i32 = arith.constant 0 : i32
    %c0_i32_0 = arith.constant 0 : i32
    %c0_i32_1 = arith.constant 0 : i32
    return %c0_i32, %c0_i32_0 : i32, i32
  }
  func.func @transform_11(%arg0: i32, %arg1: i32) -> (i32, i32) {
    %c0_i32 = arith.constant 0 : i32
    %c0_i32_0 = arith.constant 0 : i32
    %c0_i32_1 = arith.constant 0 : i32
    return %c0_i32, %c0_i32_0 : i32, i32
  }
  func.func @transform_12(%arg0: i32, %arg1: i32) -> (i32, i32) {
    %c0_i32 = arith.constant 0 : i32
    %c0_i32_0 = arith.constant 0 : i32
    %c0_i32_1 = arith.constant 0 : i32
    return %c0_i32, %c0_i32_0 : i32, i32
  }
  func.func @transform_13(%arg0: i32, %arg1: i32) -> (i32, i32) {
    %c0_i32 = arith.constant 0 : i32
    %c0_i32_0 = arith.constant 0 : i32
    %c0_i32_1 = arith.constant 0 : i32
    return %c0_i32, %c0_i32_0 : i32, i32
  }
  func.func @transform_14(%arg0: i32, %arg1: i32) -> (i32, i32) {
    %c0_i32 = arith.constant 0 : i32
    %c0_i32_0 = arith.constant 0 : i32
    %c0_i32_1 = arith.constant 0 : i32
    return %c0_i32, %c0_i32_0 : i32, i32
  }
  func.func @transform_15(%arg0: i32, %arg1: i32) -> (i32, i32) {
    %c0_i32 = arith.constant 0 : i32
    %c0_i32_0 = arith.constant 0 : i32
    %c0_i32_1 = arith.constant 0 : i32
    return %c0_i32, %c0_i32_0 : i32, i32
  }
  func.func @transform_16(%arg0: i32, %arg1: i32) -> (i32, i32) {
    %c0_i32 = arith.constant 0 : i32
    %c0_i32_0 = arith.constant 0 : i32
    %c0_i32_1 = arith.constant 0 : i32
    return %c0_i32, %c0_i32_0 : i32, i32
  }
  func.func @transform_17(%arg0: i32, %arg1: i32) -> (i32, i32) {
    %c0_i32 = arith.constant 0 : i32
    %c0_i32_0 = arith.constant 0 : i32
    %c0_i32_1 = arith.constant 0 : i32
    return %c0_i32, %c0_i32_0 : i32, i32
  }
  func.func @transform_18(%arg0: i32, %arg1: i32) -> (i32, i32) {
    %c0_i32 = arith.constant 0 : i32
    %c0_i32_0 = arith.constant 0 : i32
    %c0_i32_1 = arith.constant 0 : i32
    return %c0_i32, %c0_i32_0 : i32, i32
  }
  func.func @transform_19(%arg0: i32, %arg1: i32) -> (i32, i32) {
    %c0_i32 = arith.constant 0 : i32
    %c0_i32_0 = arith.constant 0 : i32
    %c0_i32_1 = arith.constant 0 : i32
    return %c0_i32, %c0_i32_0 : i32, i32
  }
  func.func @transform_20(%arg0: i32, %arg1: i32) -> (i32, i32, i32) {
    %c0_i32 = arith.constant 0 : i32
    %c0_i32_0 = arith.constant 0 : i32
    return %arg1, %arg0, %c0_i32 : i32, i32, i32
  }
  func.func @transform_21(%arg0: i32, %arg1: i32) -> (i32, i32) {
    %c0_i32 = arith.constant 0 : i32
    %c0_i32_0 = arith.constant 0 : i32
    return %arg0, %c0_i32 : i32, i32
  }
}

</mosaic_0001>

<bundles_post_ra>
// kernel: tpu_custom_call.1
= control target key start
LH: loop header
LB: loop body
LE: loop exit
PB: predicated region body
PF: predicated region fallthrough
CT: control target
= control target key end

     0   :  { %s2944_s0 = inlined_call_operand.vmem [shape: f32[1,8,128], index: 0, kind: input, shape index: {}]   ;;  %s2945_s1 = inlined_call_operand.hbm [shape: f32[8,128], index: 1, kind: input, shape index: {}, may-alias: {1,21}]   ;;  %s2946_s2 = inlined_call_operand.vmem [shape: bf16[128,128], index: 2, kind: input, shape index: {}]   ;;  %s2947_s3 = inlined_call_operand.hbm [shape: bf16[128,128], index: 3, kind: input, shape index: {}]   ;;  %s2948_s4 = inlined_call_operand.vmem [shape: f32[1,128], index: 4, kind: input, shape index: {}]   ;;  %s2949_s5 = inlined_call_operand.hbm [shape: bf16[128,128], index: 5, kind: input, shape index: {}]   ;;  %s2950_s6 = inlined_call_operand.hbm [shape: bf16[128,128], index: 6, kind: input, shape index: {}]   ;;  %s2951_s7 = inlined_call_operand.vmem [shape: f32[1,128], index: 7, kind: input, shape index: {}]   ;;  %s2952_s8 = inlined_call_operand.hbm [shape: bf16[128,128], index: 8, kind: input, shape index: {}]   ;;  %s2953_s9 = inlined_call_operand.hbm [shape: bf16[128,128], index: 9, kind: input, shape index: {}]   ;;  %s2954_s10 = inlined_call_operand.hbm [shape: bf16[128,128], index: 10, kind: input, shape index: {}]   ;;  %s2955_s11 = inlined_call_operand.hbm [shape: bf16[128,128], index: 11, kind: input, shape index: {}]   ;;  %s2956_s12 = inlined_call_operand.hbm [shape: bf16[128,128], index: 12, kind: input, shape index: {}]   ;;  %s2957_s13 = inlined_call_operand.hbm [shape: bf16[128,128], index: 13, kind: input, shape index: {}]   ;;  %s2958_s14 = inlined_call_operand.vmem [shape: f32[1,128], index: 14, kind: input, shape index: {}]   ;;  %s2959_s15 = inlined_call_operand.vmem [shape: f32[1,128], index: 15, kind: input, shape index: {}]   ;;  %s2960_s16 = inlined_call_operand.hbm [shape: f32[1,128], index: 16, kind: input, shape index: {}]   ;;  %s2961_s17 = inlined_call_operand.hbm [shape: f32[1,128], index: 17, kind: input, shape index: {}]   ;;  %s2962_s18 = inlined_call_operand.hbm [shape: bf16[128,128], index: 18, kind: input, shape index: {}]   ;;  %s2963_s19 = inlined_call_operand.hbm [shape: f32[1,128], index: 19, kind: input, shape index: {}]   ;;  %s2964_s20 = inlined_call_operand.hbm [shape: f32[1,8,128], index: 20, kind: output, shape index: {0}]   ;;  %s2965_s21 = inlined_call_operand.hbm [shape: f32[8,128], index: 21, kind: output, shape index: {1}, may-alias: {1,21}]  }
   0x1   :  { %2972 = sst [smem:[#allocation38_spill]] %s2944_s0 }
   0x2   :  { %2973 = sst [smem:[#allocation39_spill]] %s2945_s1 }
   0x3   :  { %2974 = sst [smem:[#allocation40_spill]] %s2946_s2 }
   0x4   :  { %2975 = sst [smem:[#allocation41_spill]] %s2947_s3 }
   0x5   :  { %2976 = sst [smem:[#allocation42_spill]] %s2948_s4 }
   0x6   :  { %2977 = sst [smem:[#allocation43_spill]] %s2949_s5 }
   0x7   :  { %2978 = sst [smem:[#allocation44_spill]] %s2964_s20 }
   0x8   :  { %2979 = sst [smem:[#allocation45_spill]] %s2965_s21 }
   0x9   :  { %27 = vsyncpa [#allocation3], 0 }
   0xa   :  { %28 = vsyncpa [#allocation6], 0 }
   0xb   :  { %29 = vsyncpa [#allocation9], 0 }
   0xc   :  { %30 = vsyncpa [#allocation12], 0 }
   0xd   :  { %31 = vsyncpa [#allocation15], 0 }
   0xe   :  { %32 = vsyncpa [#allocation18], 0 }
   0xf   :  { %33 = vsyncpa [#allocation21], 0 }
  0x10   :  { %34 = vsyncpa [#allocation24], 0 }
  0x11   :  { %35 = vsyncpa [#allocation4], 0 }
  0x12   :  { %36 = vsyncpa [#allocation27], 0  ;;  %s2426_s2 = smov [#allocation5]   ;;  %s2980_s3 = sld [smem:[#allocation41_spill]] }
  0x13   :  { %s56_s25 = sshll.u32 %s2426_s2, 4  ;;  %s57_s25 = int_to_ptr.vmem [resolvable:$true] %s56_s25 }
  0x18   :  { %s2054_s28 = scalar_lea.hbm %s2980_s3, 1024 }
  0x19   :  { %p2055_p0 = scmp.ne.s32.totalorder %s2980_s3, %s2054_s28  ;;  %p2058_p1 = scmp.lt.u32.totalorder %s2054_s28, %s2980_s3 }
  0x1b   :  { %p2060_p2 = pnand %p2058_p1, %p2055_p0 }
  0x1d   :  { %2063 = shalt.err (!%p2060_p2)
}
  0x1e   :  { %s2064_s5 = scalar_lea.vmem %s57_s25, 1024  ;;  %p2069_p4 = scmp.lt.s32.totalorder %s57_s25, %s57_s25 }
  0x1f   :  { %p2065_p3 = scmp.ne.s32.totalorder %s57_s25, %s2064_s5  ;;  %p2070_p5 = scmp.lt.s32.totalorder %s2064_s5, %s2064_s5 }
  0x21   :  { %p2071_p6 = por %p2070_p5, %p2069_p4 }
  0x23   :  { %p2072_p7 = pnand %p2071_p6, %p2065_p3 }
  0x25   :  { %2075 = shalt.err (!%p2072_p7)
}
  0x26   :  { %s2427_s22 = smov 64   ;;  %s2428_s23 = smov 4  }
  0x27   :  { %62 = dma.hbm_to_vmem [thread:$0]  %s2980_s3, 1024, %s57_s25, [#allocation6], %s2427_s22, %s2427_s22, %s2428_s23  }
  0x28   :  { %s2429_s2 = smov [#allocation8]   ;;  %s2430_s27 = smov [#allocation11]  }
  0x29   :  { %s82_s26 = sshll.u32 %s2429_s2, 4  ;;  %s108_s28 = sshll.u32 %s2430_s27, 4  ;;  %s83_s26 = int_to_ptr.vmem [resolvable:$true] %s82_s26  ;;  %s109_s28 = int_to_ptr.vmem [resolvable:$true] %s108_s28 }
  0x2a   :  { %s2076_s4 = scalar_lea.hbm %s2950_s6, 1024 }
  0x2b   :  { %p2077_p8 = scmp.ne.s32.totalorder %s2950_s6, %s2076_s4  ;;  %p2080_p9 = scmp.lt.u32.totalorder %s2076_s4, %s2950_s6 }
  0x2d   :  { %p2082_p10 = pnand %p2080_p9, %p2077_p8 }
  0x2f   :  { %2085 = shalt.err (!%p2082_p10)
}
  0x30   :  { %s2086_s25 = scalar_lea.vmem %s83_s26, 1024  ;;  %p2091_p12 = scmp.lt.s32.totalorder %s83_s26, %s83_s26 }
  0x31   :  { %p2087_p11 = scmp.ne.s32.totalorder %s83_s26, %s2086_s25  ;;  %p2092_p13 = scmp.lt.s32.totalorder %s2086_s25, %s2086_s25 }
  0x33   :  { %p2093_p0 = por %p2092_p13, %p2091_p12 }
  0x35   :  { %p2094_p1 = pnand %p2093_p0, %p2087_p11 }
  0x37   :  { %2097 = shalt.err (!%p2094_p1)
}
  0x38   :  { %88 = dma.hbm_to_vmem [thread:$0]  %s2950_s6, 1024, %s83_s26, [#allocation9], %s2427_s22, %s2427_s22, %s2428_s23  }
  0x39   :  { %s2098_s21 = scalar_lea.hbm %s2953_s9, 1024 }
  0x3a   :  { %p2099_p2 = scmp.ne.s32.totalorder %s2953_s9, %s2098_s21  ;;  %p2102_p3 = scmp.lt.u32.totalorder %s2098_s21, %s2953_s9 }
  0x3c   :  { %p2104_p4 = pnand %p2102_p3, %p2099_p2 }
  0x3e   :  { %2107 = shalt.err (!%p2104_p4)
}
  0x3f   :  { %s2108_s4 = scalar_lea.vmem %s109_s28, 1024  ;;  %p2113_p6 = scmp.lt.s32.totalorder %s109_s28, %s109_s28 }
  0x40   :  { %p2109_p5 = scmp.ne.s32.totalorder %s109_s28, %s2108_s4  ;;  %p2114_p7 = scmp.lt.s32.totalorder %s2108_s4, %s2108_s4 }
  0x42   :  { %p2115_p8 = por %p2114_p7, %p2113_p6 }
  0x44   :  { %p2116_p9 = pnand %p2115_p8, %p2109_p5 }
  0x46   :  { %2119 = shalt.err (!%p2116_p9)
}
  0x47   :  { %114 = dma.hbm_to_vmem [thread:$0]  %s2953_s9, 1024, %s109_s28, [#allocation12], %s2427_s22, %s2427_s22, %s2428_s23  }
  0x48   :  { %s2431_s30 = smov [#allocation14]   ;;  %s2432_s25 = smov [#allocation17]  }
  0x49   :  { %s132_s5 = sshll.u32 %s2431_s30, 4  ;;  %s156_s3 = sshll.u32 %s2432_s25, 4  ;;  %s133_s5 = int_to_ptr.vmem [resolvable:$true] %s132_s5  ;;  %s157_s3 = int_to_ptr.vmem [resolvable:$true] %s156_s3 }
  0x4a   :  { %s2120_s20 = scalar_lea.hbm %s2955_s11, 1024 }
  0x4b   :  { %p2121_p10 = scmp.ne.s32.totalorder %s2955_s11, %s2120_s20  ;;  %p2124_p11 = scmp.lt.u32.totalorder %s2120_s20, %s2955_s11 }
  0x4d   :  { %p2126_p12 = pnand %p2124_p11, %p2121_p10 }
  0x4f   :  { %2129 = shalt.err (!%p2126_p12)
}
  0x50   :  { %s2130_s9 = scalar_lea.vmem %s133_s5, 1024  ;;  %p2135_p0 = scmp.lt.s32.totalorder %s133_s5, %s133_s5 }
  0x51   :  { %p2131_p13 = scmp.ne.s32.totalorder %s133_s5, %s2130_s9  ;;  %p2136_p1 = scmp.lt.s32.totalorder %s2130_s9, %s2130_s9 }
  0x53   :  { %p2137_p2 = por %p2136_p1, %p2135_p0 }
  0x55   :  { %p2138_p3 = pnand %p2137_p2, %p2131_p13 }
  0x57   :  { %2141 = shalt.err (!%p2138_p3)
}
  0x58   :  { %138 = dma.hbm_to_vmem [thread:$0]  %s2955_s11, 1024, %s133_s5, [#allocation15], %s2427_s22, %s2427_s22, %s2428_s23  }
  0x59   :  { %s2142_s26 = scalar_lea.hbm %s2957_s13, 1024 }
  0x5a   :  { %p2143_p4 = scmp.ne.s32.totalorder %s2957_s13, %s2142_s26  ;;  %p2146_p5 = scmp.lt.u32.totalorder %s2142_s26, %s2957_s13 }
  0x5c   :  { %p2148_p6 = pnand %p2146_p5, %p2143_p4 }
  0x5e   :  { %2151 = shalt.err (!%p2148_p6)
}
  0x5f   :  { %s2152_s20 = scalar_lea.vmem %s157_s3, 1024  ;;  %p2157_p8 = scmp.lt.s32.totalorder %s157_s3, %s157_s3 }
  0x60   :  { %p2153_p7 = scmp.ne.s32.totalorder %s157_s3, %s2152_s20  ;;  %p2158_p9 = scmp.lt.s32.totalorder %s2152_s20, %s2152_s20 }
  0x62   :  { %p2159_p10 = por %p2158_p9, %p2157_p8 }
  0x64   :  { %p2160_p11 = pnand %p2159_p10, %p2153_p7 }
  0x66   :  { %2163 = shalt.err (!%p2160_p11)
}
  0x67   :  { %162 = dma.hbm_to_vmem [thread:$0]  %s2957_s13, 1024, %s157_s3, [#allocation18], %s2427_s22, %s2427_s22, %s2428_s23  }
  0x68   :  { %s2433_s21 = smov [#allocation20]   ;;  %s2434_s27 = smov [#allocation2]  }
  0x69   :  { %s183_s2 = sshll.u32 %s2433_s21, 4  ;;  %s45_s29 = sshll.u32 %s2434_s27, 4  ;;  %s184_s2 = int_to_ptr.vmem [resolvable:$true] %s183_s2  ;;  %s46_s29 = int_to_ptr.vmem [resolvable:$true] %s45_s29 }
  0x6a   :  { %s2164_s0 = scalar_lea.hbm %s2961_s17, 16 }
  0x6b   :  { %p2165_p12 = scmp.ne.s32.totalorder %s2961_s17, %s2164_s0  ;;  %p2168_p13 = scmp.lt.u32.totalorder %s2164_s0, %s2961_s17 }
  0x6d   :  { %p2170_p0 = pnand %p2168_p13, %p2165_p12 }
  0x6f   :  { %2173 = shalt.err (!%p2170_p0)
}
  0x70   :  { %s2174_s13 = scalar_lea.vmem %s184_s2, 16  ;;  %s2178_s3 = scalar_lea.vmem %s184_s2, 32 }
  0x71   :  { %p2175_p1 = scmp.ne.s32.totalorder %s184_s2, %s2174_s13  ;;  %p2179_p2 = scmp.lt.s32.totalorder %s184_s2, %s184_s2 }
  0x72   :  { %p2180_p3 = scmp.lt.s32.totalorder %s2178_s3, %s2174_s13 }
  0x74   :  { %p2181_p4 = por %p2180_p3, %p2179_p2 }
  0x76   :  { %p2182_p5 = pnand %p2181_p4, %p2175_p1 }
  0x78   :  { %2185 = shalt.err (!%p2182_p5)
}
  0x79   :  { %186 = dma.hbm_to_vmem [thread:$0]  %s2961_s17, 16, %s184_s2, [#allocation21]  }
  0x7a   :  { %s2981_s11 = sld [smem:[#allocation39_spill]] }
  0x80   :  { %s2186_s5 = scalar_lea.hbm %s2981_s11, 128 }
  0x81   :  { %p2187_p6 = scmp.ne.s32.totalorder %s2981_s11, %s2186_s5  ;;  %p2190_p7 = scmp.lt.u32.totalorder %s2186_s5, %s2981_s11 }
  0x83   :  { %p2192_p8 = pnand %p2190_p7, %p2187_p6 }
  0x85   :  { %2195 = shalt.err (!%p2192_p8)
}
  0x86   :  { %s2196_s0 = scalar_lea.vmem %s46_s29, 128  ;;  %p2201_p10 = scmp.lt.s32.totalorder %s46_s29, %s46_s29 }
  0x87   :  { %p2197_p9 = scmp.ne.s32.totalorder %s46_s29, %s2196_s0  ;;  %p2202_p11 = scmp.lt.s32.totalorder %s2196_s0, %s2196_s0 }
  0x89   :  { %p2203_p12 = por %p2202_p11, %p2201_p10 }
  0x8b   :  { %p2204_p13 = pnand %p2203_p12, %p2197_p9 }
  0x8d   :  { %2207 = shalt.err (!%p2204_p13)
}
  0x8e   :  { %48 = dma.hbm_to_vmem [thread:$0]  %s2981_s11, 128, %s46_s29, [#allocation3]  }
  0x8f   :  { %s2435_s4 = smov [#allocation7]   ;;  %s2436_s26 = smov [#allocation10]  }
  0x90   :  { %s70_s6 = sshll.u32 %s2435_s4, 4  ;;  %s96_s30 = sshll.u32 %s2436_s26, 4  ;;  %s71_s6 = int_to_ptr.vmem [resolvable:$true] %s70_s6  ;;  %s97_s30 = int_to_ptr.vmem [resolvable:$true] %s96_s30 }
  0x91   :  { %s2982_s25 = sld [smem:[#allocation43_spill]] }
  0x97   :  { %s2208_s1 = scalar_lea.hbm %s2982_s25, 1024 }
  0x98   :  { %p2209_p0 = scmp.ne.s32.totalorder %s2982_s25, %s2208_s1  ;;  %p2212_p1 = scmp.lt.u32.totalorder %s2208_s1, %s2982_s25 }
  0x9a   :  { %p2214_p2 = pnand %p2212_p1, %p2209_p0 }
  0x9c   :  { %2217 = shalt.err (!%p2214_p2)
}
  0x9d   :  { %s2218_s29 = scalar_lea.vmem %s71_s6, 1024  ;;  %p2223_p4 = scmp.lt.s32.totalorder %s71_s6, %s71_s6 }
  0x9e   :  { %p2219_p3 = scmp.ne.s32.totalorder %s71_s6, %s2218_s29  ;;  %p2224_p5 = scmp.lt.s32.totalorder %s2218_s29, %s2218_s29 }
  0xa0   :  { %p2225_p6 = por %p2224_p5, %p2223_p4 }
  0xa2   :  { %p2226_p7 = pnand %p2225_p6, %p2219_p3 }
  0xa4   :  { %2229 = shalt.err (!%p2226_p7)
}
  0xa5   :  { %76 = dma.hbm_to_vmem [thread:$0]  %s2982_s25, 1024, %s71_s6, [#allocation6], %s2427_s22, %s2427_s22, %s2428_s23  }
  0xa6   :  { %s2230_s0 = scalar_lea.hbm %s2952_s8, 1024 }
  0xa7   :  { %p2231_p8 = scmp.ne.s32.totalorder %s2952_s8, %s2230_s0  ;;  %p2234_p9 = scmp.lt.u32.totalorder %s2230_s0, %s2952_s8 }
  0xa9   :  { %p2236_p10 = pnand %p2234_p9, %p2231_p8 }
  0xab   :  { %2239 = shalt.err (!%p2236_p10)
}
  0xac   :  { %s2240_s13 = scalar_lea.vmem %s97_s30, 1024  ;;  %p2245_p12 = scmp.lt.s32.totalorder %s97_s30, %s97_s30 }
  0xad   :  { %p2241_p11 = scmp.ne.s32.totalorder %s97_s30, %s2240_s13  ;;  %p2246_p13 = scmp.lt.s32.totalorder %s2240_s13, %s2240_s13 }
  0xaf   :  { %p2247_p0 = por %p2246_p13, %p2245_p12 }
  0xb1   :  { %p2248_p1 = pnand %p2247_p0, %p2241_p11 }
  0xb3   :  { %2251 = shalt.err (!%p2248_p1)
}
  0xb4   :  { %102 = dma.hbm_to_vmem [thread:$0]  %s2952_s8, 1024, %s97_s30, [#allocation9], %s2427_s22, %s2427_s22, %s2428_s23  }
  0xb5   :  { %s2437_s25 = smov [#allocation13]   ;;  %s2438_s24 = smov [#allocation16]  }
  0xb6   :  { %s120_s1 = sshll.u32 %s2437_s25, 4  ;;  %s144_s20 = sshll.u32 %s2438_s24, 4  ;;  %s121_s1 = int_to_ptr.vmem [resolvable:$true] %s120_s1  ;;  %s145_s20 = int_to_ptr.vmem [resolvable:$true] %s144_s20 }
  0xb7   :  { %s2252_s29 = scalar_lea.hbm %s2954_s10, 1024 }
  0xb8   :  { %p2253_p2 = scmp.ne.s32.totalorder %s2954_s10, %s2252_s29  ;;  %p2256_p3 = scmp.lt.u32.totalorder %s2252_s29, %s2954_s10 }
  0xba   :  { %p2258_p4 = pnand %p2256_p3, %p2253_p2 }
  0xbc   :  { %2261 = shalt.err (!%p2258_p4)
}
  0xbd   :  { %s2262_s8 = scalar_lea.vmem %s121_s1, 1024  ;;  %p2267_p6 = scmp.lt.s32.totalorder %s121_s1, %s121_s1 }
  0xbe   :  { %p2263_p5 = scmp.ne.s32.totalorder %s121_s1, %s2262_s8  ;;  %p2268_p7 = scmp.lt.s32.totalorder %s2262_s8, %s2262_s8 }
  0xc0   :  { %p2269_p8 = por %p2268_p7, %p2267_p6 }
  0xc2   :  { %p2270_p9 = pnand %p2269_p8, %p2263_p5 }
  0xc4   :  { %2273 = shalt.err (!%p2270_p9)
}
  0xc5   :  { %126 = dma.hbm_to_vmem [thread:$0]  %s2954_s10, 1024, %s121_s1, [#allocation12], %s2427_s22, %s2427_s22, %s2428_s23  }
  0xc6   :  { %s2274_s4 = scalar_lea.hbm %s2956_s12, 1024 }
  0xc7   :  { %p2275_p10 = scmp.ne.s32.totalorder %s2956_s12, %s2274_s4  ;;  %p2278_p11 = scmp.lt.u32.totalorder %s2274_s4, %s2956_s12 }
  0xc9   :  { %p2280_p12 = pnand %p2278_p11, %p2275_p10 }
  0xcb   :  { %2283 = shalt.err (!%p2280_p12)
}
  0xcc   :  { %s2284_s25 = scalar_lea.vmem %s145_s20, 1024  ;;  %p2289_p0 = scmp.lt.s32.totalorder %s145_s20, %s145_s20 }
  0xcd   :  { %p2285_p13 = scmp.ne.s32.totalorder %s145_s20, %s2284_s25  ;;  %p2290_p1 = scmp.lt.s32.totalorder %s2284_s25, %s2284_s25 }
  0xcf   :  { %p2291_p2 = por %p2290_p1, %p2289_p0 }
  0xd1   :  { %p2292_p3 = pnand %p2291_p2, %p2285_p13 }
  0xd3   :  { %2295 = shalt.err (!%p2292_p3)
}
  0xd4   :  { %150 = dma.hbm_to_vmem [thread:$0]  %s2956_s12, 1024, %s145_s20, [#allocation15], %s2427_s22, %s2427_s22, %s2428_s23  }
  0xd5   :  { %s2439_s24 = smov [#allocation19]   ;;  %s2440_s21 = smov [#allocation22]  }
  0xd6   :  { %s173_s5 = sshll.u32 %s2439_s24, 4  ;;  %s192_s29 = sshll.u32 %s2440_s21, 4  ;;  %s174_s5 = int_to_ptr.vmem [resolvable:$true] %s173_s5  ;;  %s193_s29 = int_to_ptr.vmem [resolvable:$true] %s192_s29 }
  0xd7   :  { %s2296_s9 = scalar_lea.hbm %s2960_s16, 16 }
  0xd8   :  { %p2297_p4 = scmp.ne.s32.totalorder %s2960_s16, %s2296_s9  ;;  %p2300_p5 = scmp.lt.u32.totalorder %s2296_s9, %s2960_s16 }
  0xda   :  { %p2302_p6 = pnand %p2300_p5, %p2297_p4 }
  0xdc   :  { %2305 = shalt.err (!%p2302_p6)
}
  0xdd   :  { %s2306_s12 = scalar_lea.vmem %s174_s5, 16  ;;  %s2310_s20 = scalar_lea.vmem %s174_s5, 32 }
  0xde   :  { %p2307_p7 = scmp.ne.s32.totalorder %s174_s5, %s2306_s12  ;;  %p2311_p8 = scmp.lt.s32.totalorder %s174_s5, %s174_s5 }
  0xdf   :  { %p2312_p9 = scmp.lt.s32.totalorder %s2310_s20, %s2306_s12 }
  0xe1   :  { %p2313_p10 = por %p2312_p9, %p2311_p8 }
  0xe3   :  { %p2314_p11 = pnand %p2313_p10, %p2307_p7 }
  0xe5   :  { %2317 = shalt.err (!%p2314_p11)
}
  0xe6   :  { %176 = dma.hbm_to_vmem [thread:$0]  %s2960_s16, 16, %s174_s5, [#allocation18]  }
  0xe7   :  { %s2318_s13 = scalar_lea.hbm %s2962_s18, 1024 }
  0xe8   :  { %p2319_p12 = scmp.ne.s32.totalorder %s2962_s18, %s2318_s13  ;;  %p2322_p13 = scmp.lt.u32.totalorder %s2318_s13, %s2962_s18 }
  0xea   :  { %p2324_p0 = pnand %p2322_p13, %p2319_p12 }
  0xec   :  { %2327 = shalt.err (!%p2324_p0)
}
  0xed   :  { %s2328_s1 = scalar_lea.vmem %s193_s29, 1024  ;;  %p2333_p2 = scmp.lt.s32.totalorder %s193_s29, %s193_s29 }
  0xee   :  { %p2329_p1 = scmp.ne.s32.totalorder %s193_s29, %s2328_s1  ;;  %p2334_p3 = scmp.lt.s32.totalorder %s2328_s1, %s2328_s1 }
  0xf0   :  { %p2335_p4 = por %p2334_p3, %p2333_p2 }
  0xf2   :  { %p2336_p5 = pnand %p2335_p4, %p2329_p1 }
  0xf4   :  { %2339 = shalt.err (!%p2336_p5)
}
  0xf5   :  { %198 = dma.hbm_to_vmem [thread:$0]  %s2962_s18, 1024, %s193_s29, [#allocation21], %s2427_s22, %s2427_s22, %s2428_s23  }
  0xf6   :  { %s2441_s5 = smov [#allocation23]   ;;  %s2340_s9 = scalar_lea.hbm %s2963_s19, 16 }
  0xf7   :  { %s205_s21 = sshll.u32 %s2441_s5, 4  ;;  %p2341_p6 = scmp.ne.s32.totalorder %s2963_s19, %s2340_s9  ;;  %s206_s21 = int_to_ptr.vmem [resolvable:$true] %s205_s21 }
  0xf8   :  { %p2344_p7 = scmp.lt.u32.totalorder %s2340_s9, %s2963_s19 }
  0xfa   :  { %p2346_p8 = pnand %p2344_p7, %p2341_p6 }
  0xfc   :  { %2349 = shalt.err (!%p2346_p8)
}
  0xfd   :  { %s2350_s12 = scalar_lea.vmem %s206_s21, 16  ;;  %s2354_s18 = scalar_lea.vmem %s206_s21, 32 }
  0xfe   :  { %p2351_p9 = scmp.ne.s32.totalorder %s206_s21, %s2350_s12  ;;  %p2355_p10 = scmp.lt.s32.totalorder %s206_s21, %s206_s21 }
  0xff   :  { %p2356_p11 = scmp.lt.s32.totalorder %s2354_s18, %s2350_s12 }
 0x101   :  { %p2357_p12 = por %p2356_p11, %p2355_p10 }
 0x103   :  { %p2358_p13 = pnand %p2357_p12, %p2351_p9 }
 0x105   :  { %2361 = shalt.err (!%p2358_p13)
}
 0x106   :  { %208 = dma.hbm_to_vmem [thread:$0]  %s2963_s19, 16, %s206_s21, [#allocation24]  }
 0x107   :  { %2406 = dma.done.wait [#allocation3], 128  }
 0x108   :  { %2407 = vsyncadd [#allocation3], 4294967168 }
 0x109   :  { %2408 = dma.done.wait [#allocation6], 2048  }
 0x10a   :  { %2409 = vsyncadd [#allocation6], 4294965248 }
 0x10b   :  { %2410 = dma.done.wait [#allocation9], 2048  }
 0x10c   :  { %2411 = vsyncadd [#allocation9], 4294965248 }
 0x10d   :  { %2412 = dma.done.wait [#allocation12], 2048  }
 0x10e   :  { %2413 = vsyncadd [#allocation12], 4294965248 }
 0x10f   :  { %2414 = dma.done.wait [#allocation15], 2048  }
 0x110   :  { %2415 = vsyncadd [#allocation15], 4294965248 }
 0x111   :  { %2416 = dma.done.wait [#allocation18], 1040  }
 0x112   :  { %2417 = vsyncadd [#allocation18], 4294966256 }
 0x113   :  { %2418 = dma.done.wait [#allocation21], 1040  }
 0x114   :  { %2419 = vsyncadd [#allocation21], 4294966256 }
 0x115   :  { %2420 = dma.done.wait [#allocation24], 16  }
 0x116   :  { %2421 = vsyncadd [#allocation24], 4294967280  ;;  %v2442_v0 = vmov 0.0   ;;  %vm2443_vm0 = vmmov 0   ;;  %v1956_v1 = vld [vmem:[#allocation5] sm:$0xff]   ;;  %s2983_s20 = sld [smem:[#allocation40_spill]] }
 0x117   :  { %1716 = vmatprep.subr.bf16.mxu0 %v2442_v0  ;;  %1736 = vmatprep.subr.bf16.mxu1 %v2442_v0  ;;  %v1958_v3 = vld [vmem:[#allocation5 + $0x8] sm:$0xff]   ;;  %v1960_v5 = vld [vmem:[#allocation5 + $0x10] sm:$0xff]   ;;  %v1962_v7 = vld [vmem:[#allocation5 + $0x18] sm:$0xff]   ;;  %s2984_s9 = sld [smem:[#allocation38_spill]]  ;;  %s2985_s30 = sld [smem:[#allocation42_spill]] }
 0x118   :  { %1732 = vmatprep.mubr.msk.bf16.mxu0 %vm2443_vm0, %v2442_v0  ;;  %1752 = vmatprep.mubr.msk.bf16.mxu1 %vm2443_vm0, %v2442_v0  ;;  %v1964_v9 = vld [vmem:[#allocation5 + $0x20] sm:$0xff]   ;;  %v1966_v11 = vld [vmem:[#allocation5 + $0x28] sm:$0xff]   ;;  %v1968_v13 = vld [vmem:[#allocation5 + $0x30] sm:$0xff]  }
 0x119   :  { %1717 = vmatpush3.bf16.msra.mxu0 %v1956_v1  ;;  %v1970_v15 = vld [vmem:[#allocation5 + $0x38] sm:$0xff]   ;;  %v1972_v19 = vld [vmem:[#allocation8] sm:$0xff]   ;;  %v1974_v23 = vld [vmem:[#allocation8 + $0x8] sm:$0xff]  }
 0x11a   :  { %1718 = vmatprep.subr.bf16.mxu0 %v2442_v0  ;;  %v2796_v17 = vld [vmem:[#allocation2] sm:$0xff]  ;;  %v1973_v21 = vld [vmem:[#allocation7] sm:$0xff]   ;;  %v1975_v24 = vld [vmem:[#allocation7 + $0x8] sm:$0xff]  }
 0x11b   :  { %v2805_v20 = vpack.c.bf16 %v2796_v17, %v2796_v17  ;;  %v1976_v25 = vld [vmem:[#allocation8 + $0x10] sm:$0xff]   ;;  %v1978_v27 = vld [vmem:[#allocation8 + $0x18] sm:$0xff]   ;;  %v1980_v29 = vld [vmem:[#allocation8 + $0x20] sm:$0xff]  }
 0x11c   :  { %v1957_v2 = vld [vmem:[%s2983_s20] sm:$0xff]   ;;  %v1959_v4 = vld [vmem:[%s2983_s20 + $0x8] sm:$0xff]   ;;  %v1961_v6 = vld [vmem:[%s2983_s20 + $0x10] sm:$0xff]  }
 0x11d   :  { %1737 = vmatpush3.bf16.msra.mxu1 %v1957_v2  ;;  %1719 = vmatpush3.bf16.msra.mxu0 %v1958_v3  ;;  %v1963_v8 = vld [vmem:[%s2983_s20 + $0x18] sm:$0xff]   ;;  %v1965_v10 = vld [vmem:[%s2983_s20 + $0x20] sm:$0xff]   ;;  %v1967_v12 = vld [vmem:[%s2983_s20 + $0x28] sm:$0xff]  }
 0x11e   :  { %1738 = vmatprep.subr.bf16.mxu1 %v2442_v0  ;;  %1720 = vmatprep.subr.bf16.mxu0 %v2442_v0  ;;  %v1969_v14 = vld [vmem:[%s2983_s20 + $0x30] sm:$0xff]   ;;  %v1971_v16 = vld [vmem:[%s2983_s20 + $0x38] sm:$0xff]   ;;  %v258_v18 = vld [vmem:[%s2984_s9] sm:$0xff] }
 0x11f   :  { %v260_v22 = vpack.c.bf16 %v258_v18, %v258_v18  ;;  %v1977_v26 = vld [vmem:[#allocation7 + $0x10] sm:$0xff]   ;;  %v1979_v28 = vld [vmem:[#allocation7 + $0x18] sm:$0xff]   ;;  %v1981_v30 = vld [vmem:[#allocation7 + $0x20] sm:$0xff]  }
 0x120   :  { %v1982_v31 = vld [vmem:[#allocation8 + $0x28] sm:$0xff]   ;;  %v1984_v33 = vld [vmem:[#allocation8 + $0x30] sm:$0xff]   ;;  %v1986_v35 = vld [vmem:[#allocation8 + $0x38] sm:$0xff]  }
 0x121   :  { %1739 = vmatpush3.bf16.msra.mxu1 %v1959_v4  ;;  %1721 = vmatpush3.bf16.msra.mxu0 %v1960_v5  ;;  %v1983_v32 = vld [vmem:[#allocation7 + $0x28] sm:$0xff]   ;;  %v1985_v34 = vld [vmem:[#allocation7 + $0x30] sm:$0xff]   ;;  %v1987_v36 = vld [vmem:[#allocation7 + $0x38] sm:$0xff]  }
 0x122   :  { %1740 = vmatprep.subr.bf16.mxu1 %v2442_v0  ;;  %1722 = vmatprep.subr.bf16.mxu0 %v2442_v0  ;;  %v1988_v37 = vld [vmem:[#allocation14] sm:$0xff]   ;;  %v1989_v38 = vld [vmem:[#allocation14 + $0x8] sm:$0xff]   ;;  %v1990_v39 = vld [vmem:[#allocation14 + $0x10] sm:$0xff]  }
 0x123   :  { %v1991_v40 = vld [vmem:[#allocation14 + $0x18] sm:$0xff]   ;;  %v1992_v41 = vld [vmem:[#allocation14 + $0x20] sm:$0xff]   ;;  %v1993_v42 = vld [vmem:[#allocation14 + $0x28] sm:$0xff]  }
 0x124   :  { %v1994_v43 = vld [vmem:[#allocation14 + $0x30] sm:$0xff]   ;;  %v1995_v44 = vld [vmem:[#allocation14 + $0x38] sm:$0xff]   ;;  %v1996_v45 = vld [vmem:[#allocation16] sm:$0xff]  }
 0x125   :  { %1741 = vmatpush3.bf16.msra.mxu1 %v1961_v6  ;;  %1723 = vmatpush3.bf16.msra.mxu0 %v1962_v7  ;;  %v1997_v46 = vld [vmem:[#allocation16 + $0x8] sm:$0xff]   ;;  %v1998_v47 = vld [vmem:[#allocation16 + $0x10] sm:$0xff]   ;;  %v1999_v48 = vld [vmem:[#allocation16 + $0x18] sm:$0xff]  }
 0x126   :  { %1742 = vmatprep.subr.bf16.mxu1 %v2442_v0  ;;  %1724 = vmatprep.subr.bf16.mxu0 %v2442_v0  ;;  %v2000_v49 = vld [vmem:[#allocation16 + $0x20] sm:$0xff]   ;;  %v2001_v50 = vld [vmem:[#allocation16 + $0x28] sm:$0xff]   ;;  %v2002_v51 = vld [vmem:[#allocation16 + $0x30] sm:$0xff]  }
 0x127   :  { %v2003_v52 = vld [vmem:[#allocation16 + $0x38] sm:$0xff]   ;;  %v2005_v53 = vld [vmem:[#allocation13] sm:$0xff]   ;;  %v2007_v54 = vld [vmem:[#allocation13 + $0x8] sm:$0xff]  }
 0x128   :  { %v2009_v55 = vld [vmem:[#allocation13 + $0x10] sm:$0xff]   ;;  %v2011_v56 = vld [vmem:[#allocation13 + $0x18] sm:$0xff]   ;;  %v2013_v57 = vld [vmem:[#allocation13 + $0x20] sm:$0xff]  }
 0x129   :  { %1743 = vmatpush3.bf16.msra.mxu1 %v1963_v8  ;;  %1725 = vmatpush3.bf16.msra.mxu0 %v1964_v9  ;;  %v2015_v58 = vld [vmem:[#allocation13 + $0x28] sm:$0xff]   ;;  %v1536_v61 = vld [vmem:[%s2985_s30] ss:$0 sm:$0xff]  ;;  %v2004_v7 = vld [vmem:[#allocation10] sm:$0xff]  }
 0x12a   :  { %1744 = vmatprep.subr.bf16.mxu1 %v2442_v0  ;;  %1726 = vmatprep.subr.bf16.mxu0 %v2442_v0  ;;  %v2006_v9 = vld [vmem:[#allocation10 + $0x8] sm:$0xff]   ;;  %v2016_v18 = vld [vmem:[#allocation10 + $0x30] sm:$0xff]  }
 0x12d   :  { %1745 = vmatpush3.bf16.msra.mxu1 %v1965_v10  ;;  %1727 = vmatpush3.bf16.msra.mxu0 %v1966_v11  ;;  %v2008_v10 = vld [vmem:[#allocation10 + $0x10] sm:$0xff]   ;;  %v2010_v11 = vld [vmem:[#allocation10 + $0x18] sm:$0xff]  }
 0x12e   :  { %1746 = vmatprep.subr.bf16.mxu1 %v2442_v0  ;;  %1728 = vmatprep.subr.bf16.mxu0 %v2442_v0 }
 0x131   :  { %1747 = vmatpush3.bf16.msra.mxu1 %v1967_v12  ;;  %1729 = vmatpush3.bf16.msra.mxu0 %v1968_v13  ;;  %v2012_v12 = vld [vmem:[#allocation10 + $0x20] sm:$0xff]   ;;  %v2014_v13 = vld [vmem:[#allocation10 + $0x28] sm:$0xff]  }
 0x132   :  { %1748 = vmatprep.subr.bf16.mxu1 %v2442_v0  ;;  %1730 = vmatprep.subr.bf16.mxu0 %v2442_v0 }
 0x135   :  { %1749 = vmatpush3.bf16.msra.mxu1 %v1969_v14  ;;  %1731 = vmatpush3.bf16.msra.mxu0 %v1970_v15 }
 0x136   :  { %1750 = vmatprep.subr.bf16.mxu1 %v2442_v0  ;;  %1756 = vmatprep.subr.bf16.mxu0 %v2442_v0 }
 0x138   :  { %1733 = vmatmul.mubr.bf16.vlgmr.msra.gmra.mrb[0].mxu0 %v2805_v20 }
 0x139   :  { %1751 = vmatpush3.bf16.msra.mxu1 %v1971_v16  ;;  %1757 = vmatpush3.bf16.msra.mxu0 %v1972_v19 }
 0x13a   :  { %1776 = vmatprep.subr.bf16.mxu1 %v2442_v0  ;;  %1758 = vmatprep.subr.bf16.mxu0 %v2442_v0 }
 0x13b   :  { %1772 = vmatprep.mubr.msk.bf16.mxu0 %vm2443_vm0, %v2442_v0 }
 0x13c   :  { %1753 = vmatmul.mubr.bf16.vlgmr.msra.gmra.mrb[0].mxu1 %v260_v22 }
 0x13d   :  { %1777 = vmatpush3.bf16.msra.mxu1 %v1973_v21  ;;  %1792 = vmatprep.mubr.msk.bf16.mxu1 %vm2443_vm0, %v2442_v0  ;;  %v2017_v21 = vld [vmem:[#allocation13 + $0x30] sm:$0xff]  }
 0x13e   :  { %1778 = vmatprep.subr.bf16.mxu1 %v2442_v0  ;;  %1759 = vmatpush3.bf16.msra.mxu0 %v1974_v23  ;;  %v2019_v23 = vld [vmem:[#allocation13 + $0x38] sm:$0xff]  }
 0x13f   :  { %1760 = vmatprep.subr.bf16.mxu0 %v2442_v0 }
 0x141   :  { %1779 = vmatpush3.bf16.msra.mxu1 %v1975_v24 }
 0x142   :  { %1780 = vmatprep.subr.bf16.mxu1 %v2442_v0  ;;  %1761 = vmatpush3.bf16.msra.mxu0 %v1976_v25 }
 0x143   :  { %1762 = vmatprep.subr.bf16.mxu0 %v2442_v0 }
 0x145   :  { %1781 = vmatpush3.bf16.msra.mxu1 %v1977_v26 }
 0x146   :  { %1782 = vmatprep.subr.bf16.mxu1 %v2442_v0  ;;  %1763 = vmatpush3.bf16.msra.mxu0 %v1978_v27 }
 0x147   :  { %1764 = vmatprep.subr.bf16.mxu0 %v2442_v0 }
 0x149   :  { %1783 = vmatpush3.bf16.msra.mxu1 %v1979_v28 }
 0x14a   :  { %1784 = vmatprep.subr.bf16.mxu1 %v2442_v0  ;;  %1765 = vmatpush3.bf16.msra.mxu0 %v1980_v29 }
 0x14b   :  { %1766 = vmatprep.subr.bf16.mxu0 %v2442_v0 }
 0x14d   :  { %1785 = vmatpush3.bf16.msra.mxu1 %v1981_v30 }
 0x14e   :  { %1786 = vmatprep.subr.bf16.mxu1 %v2442_v0  ;;  %1767 = vmatpush3.bf16.msra.mxu0 %v1982_v31 }
 0x14f   :  { %1768 = vmatprep.subr.bf16.mxu0 %v2442_v0 }
 0x151   :  { %1787 = vmatpush3.bf16.msra.mxu1 %v1983_v32 }
 0x152   :  { %1788 = vmatprep.subr.bf16.mxu1 %v2442_v0  ;;  %1769 = vmatpush3.bf16.msra.mxu0 %v1984_v33  ;;  %v1553_v33 = vld [vmem:[%s2951_s7] ss:$0 sm:$0xff] }
 0x153   :  { %1770 = vmatprep.subr.bf16.mxu0 %v2442_v0 }
 0x155   :  { %1789 = vmatpush3.bf16.msra.mxu1 %v1985_v34 }
 0x156   :  { %1771 = vmatpush3.bf16.msra.mxu0 %v1986_v35  ;;  %1790 = vmatprep.subr.bf16.mxu1 %v2442_v0 }
 0x157   :  { %1796 = vmatprep.subr.bf16.mxu0 %v2442_v0 }
 0x159   :  { %1773 = vmatmul.mubr.bf16.vlgmr.msra.gmra.mrb[4].mxu0 %v260_v22  ;;  %1791 = vmatpush3.bf16.msra.mxu1 %v1987_v36  ;;  %v2018_v22 = vld [vmem:[#allocation10 + $0x38] sm:$0xff]  }
 0x15a   :  { %1812 = vmatprep.mubr.msk.bf16.mxu0 %vm2443_vm0, %v2442_v0  ;;  %1816 = vmatprep.subr.bf16.mxu1 %v2442_v0 }
 0x15b   :  { %1797 = vmatpush3.bf16.msra.mxu0 %v1988_v37 }
 0x15c   :  { %1798 = vmatprep.subr.bf16.mxu0 %v2442_v0 }
 0x15f   :  { %1799 = vmatpush3.bf16.msra.mxu0 %v1989_v38 }
 0x160   :  { %1800 = vmatprep.subr.bf16.mxu0 %v2442_v0 }
 0x163   :  { %1801 = vmatpush3.bf16.msra.mxu0 %v1990_v39 }
 0x164   :  { %1802 = vmatprep.subr.bf16.mxu0 %v2442_v0 }
 0x167   :  { %1803 = vmatpush3.bf16.msra.mxu0 %v1991_v40  ;;  %v2020_v40 = vld [vmem:[#allocation11] sm:$0xff]  }
 0x168   :  { %1804 = vmatprep.subr.bf16.mxu0 %v2442_v0 }
 0x16b   :  { %1805 = vmatpush3.bf16.msra.mxu0 %v1992_v41 }
 0x16c   :  { %1806 = vmatprep.subr.bf16.mxu0 %v2442_v0 }
 0x16f   :  { %1807 = vmatpush3.bf16.msra.mxu0 %v1993_v42  ;;  %v2021_v42 = vld [vmem:[#allocation11 + $0x8] sm:$0xff]  }
 0x170   :  { %1808 = vmatprep.subr.bf16.mxu0 %v2442_v0 }
 0x173   :  { %1809 = vmatpush3.bf16.msra.mxu0 %v1994_v43  ;;  %v2022_v43 = vld [vmem:[#allocation11 + $0x10] sm:$0xff]  }
 0x174   :  { %1810 = vmatprep.subr.bf16.mxu0 %v2442_v0 }
 0x177   :  { %1811 = vmatpush3.bf16.msra.mxu0 %v1995_v44  ;;  %v2023_v44 = vld [vmem:[#allocation11 + $0x18] sm:$0xff]  }
 0x178   :  { %1836 = vmatprep.subr.bf16.mxu0 %v2442_v0 }
 0x17a   :  { %1813 = vmatmul.mubr.bf16.vlgmr.msra.gmra.mrb[8].mxu0 %v2805_v20 }
 0x17b   :  { %1837 = vmatpush3.bf16.msra.mxu0 %v1996_v45  ;;  %1852 = vmatprep.mubr.msk.bf16.mxu0 %vm2443_vm0, %v2442_v0  ;;  %v2024_v45 = vld [vmem:[#allocation11 + $0x20] sm:$0xff]  }
 0x17c   :  { %1838 = vmatprep.subr.bf16.mxu0 %v2442_v0 }
 0x17f   :  { %1839 = vmatpush3.bf16.msra.mxu0 %v1997_v46  ;;  %v2025_v46 = vld [vmem:[#allocation11 + $0x28] sm:$0xff]  }
 0x180   :  { %1840 = vmatprep.subr.bf16.mxu0 %v2442_v0 }
 0x183   :  { %1841 = vmatpush3.bf16.msra.mxu0 %v1998_v47  ;;  %v2026_v47 = vld [vmem:[#allocation11 + $0x30] sm:$0xff]  }
 0x184   :  { %1842 = vmatprep.subr.bf16.mxu0 %v2442_v0 }
 0x187   :  { %1843 = vmatpush3.bf16.msra.mxu0 %v1999_v48  ;;  %v2027_v48 = vld [vmem:[#allocation11 + $0x38] sm:$0xff]  }
 0x188   :  { %1844 = vmatprep.subr.bf16.mxu0 %v2442_v0 }
 0x18b   :  { %1845 = vmatpush3.bf16.msra.mxu0 %v2000_v49  ;;  %v2028_v49 = vld [vmem:[#allocation17] sm:$0xff]  }
 0x18c   :  { %1846 = vmatprep.subr.bf16.mxu0 %v2442_v0 }
 0x18f   :  { %1847 = vmatpush3.bf16.msra.mxu0 %v2001_v50  ;;  %v2029_v50 = vld [vmem:[#allocation17 + $0x8] sm:$0xff]  }
 0x190   :  { %1848 = vmatprep.subr.bf16.mxu0 %v2442_v0 }
 0x193   :  { %1849 = vmatpush3.bf16.msra.mxu0 %v2002_v51  ;;  %v2030_v51 = vld [vmem:[#allocation17 + $0x10] sm:$0xff]  }
 0x194   :  { %1850 = vmatprep.subr.bf16.mxu0 %v2442_v0 }
 0x197   :  { %1851 = vmatpush3.bf16.msra.mxu0 %v2003_v52  ;;  %v2031_v52 = vld [vmem:[#allocation17 + $0x18] sm:$0xff]  }
 0x198   :  { %1876 = vmatprep.subr.bf16.mxu0 %v2442_v0 }
 0x19a   :  { %1853 = vmatmul.mubr.bf16.vlgmr.msra.gmra.mrb[12].mxu0 %v2805_v20 }
 0x19b   :  { %1877 = vmatpush3.bf16.msra.mxu0 %v2005_v53  ;;  %1892 = vmatprep.mubr.msk.bf16.mxu0 %vm2443_vm0, %v2442_v0  ;;  %v2032_v53 = vld [vmem:[#allocation17 + $0x20] sm:$0xff]  }
 0x19c   :  { %1878 = vmatprep.subr.bf16.mxu0 %v2442_v0 }
 0x19f   :  { %1879 = vmatpush3.bf16.msra.mxu0 %v2007_v54  ;;  %v2033_v54 = vld [vmem:[#allocation17 + $0x28] sm:$0xff]  }
 0x1a0   :  { %1880 = vmatprep.subr.bf16.mxu0 %v2442_v0 }
 0x1a3   :  { %1881 = vmatpush3.bf16.msra.mxu0 %v2009_v55  ;;  %v2034_v55 = vld [vmem:[#allocation17 + $0x30] sm:$0xff]  }
 0x1a4   :  { %1882 = vmatprep.subr.bf16.mxu0 %v2442_v0 }
 0x1a7   :  { %1883 = vmatpush3.bf16.msra.mxu0 %v2011_v56  ;;  %v2035_v56 = vld [vmem:[#allocation17 + $0x38] sm:$0xff]  }
 0x1a8   :  { %1884 = vmatprep.subr.bf16.mxu0 %v2442_v0 }
 0x1ab   :  { %1885 = vmatpush3.bf16.msra.mxu0 %v2013_v57  ;;  %v2036_v57 = vld [vmem:[#allocation22] sm:$0xff]  }
 0x1ac   :  { %1886 = vmatprep.subr.bf16.mxu0 %v2442_v0 }
 0x1af   :  { %1887 = vmatpush3.bf16.msra.mxu0 %v2015_v58  ;;  %v2037_v58 = vld [vmem:[#allocation22 + $0x8] sm:$0xff]  }
 0x1b0   :  { %1888 = vmatprep.subr.bf16.mxu0 %v2442_v0 }
 0x1b3   :  { %1889 = vmatpush3.bf16.msra.mxu0 %v2017_v21 }
 0x1b4   :  { %1890 = vmatprep.subr.bf16.mxu0 %v2442_v0 }
 0x1b7   :  { %1891 = vmatpush3.bf16.msra.mxu0 %v2019_v23 }
 0x1b8   :  { %1916 = vmatprep.subr.bf16.mxu0 %v2442_v0 }
 0x20b   :  { %v376_v59 = vpop.f32.mrb[0].mxu0 }
 0x20c   :  { %v1734_v62 = vpop.f32.mrb[1].mxu0 }
 0x20d   :  { %v379_v2 = vpop.f32.mrb[2].mxu0  ;;  %v2041_v62 = vld [vmem:[#allocation22 + $0x28] sm:$0xff]  }
 0x20e   :  { %v1735_v4 = vpop.f32.mrb[3].mxu0 }
 0x20f   :  { %v464_v60 = vpop.f32.mrb[0].mxu1 }
 0x210   :  { %v465_v63 = vadd.f32 %v464_v60, %v376_v59  ;;  %v1754_v1 = vpop.f32.mrb[1].mxu1  ;;  %v2038_v59 = vld [vmem:[#allocation22 + $0x10] sm:$0xff]   ;;  %v2039_v60 = vld [vmem:[#allocation22 + $0x18] sm:$0xff]  }
 0x211   :  { %v467_v3 = vpop.f32.mrb[2].mxu1 }
 0x212   :  { %v477_v5 = vadd.f32 %v1536_v61, %v465_v63  ;;  %v1755_v6 = vpop.f32.mrb[3].mxu1  ;;  %v2040_v61 = vld [vmem:[#allocation22 + $0x20] sm:$0xff]   ;;  %v2043_v63 = vld [vmem:[#allocation22 + $0x38] sm:$0xff]  }
 0x214   :  { %v478_v8 = vpack.c.bf16 %v477_v5, %v477_v5 }
 0x216   :  { %1793 = vmatmul.mubr.bf16.vlgmr.msra.gmra.mrb[4].mxu1 %v478_v8 }
 0x217   :  { %1817 = vmatpush3.bf16.msra.mxu1 %v2004_v7  ;;  %1832 = vmatprep.mubr.msk.bf16.mxu1 %vm2443_vm0, %v2442_v0 }
 0x218   :  { %1818 = vmatprep.subr.bf16.mxu1 %v2442_v0 }
 0x21b   :  { %1819 = vmatpush3.bf16.msra.mxu1 %v2006_v9 }
 0x21c   :  { %1820 = vmatprep.subr.bf16.mxu1 %v2442_v0 }
 0x21f   :  { %1821 = vmatpush3.bf16.msra.mxu1 %v2008_v10  ;;  %v1570_v10 = vld [vmem:[%s2958_s14] ss:$0 sm:$0xff]  ;;  %s2444_s14 = smov [#allocation26]  }
 0x220   :  { %1822 = vmatprep.subr.bf16.mxu1 %v2442_v0 }
 0x223   :  { %1823 = vmatpush3.bf16.msra.mxu1 %v2010_v11 }
 0x224   :  { %1824 = vmatprep.subr.bf16.mxu1 %v2442_v0 }
 0x227   :  { %1825 = vmatpush3.bf16.msra.mxu1 %v2012_v12 }
 0x228   :  { %1826 = vmatprep.subr.bf16.mxu1 %v2442_v0 }
 0x22b   :  { %1827 = vmatpush3.bf16.msra.mxu1 %v2014_v13 }
 0x22c   :  { %1828 = vmatprep.subr.bf16.mxu1 %v2442_v0  ;;  %v593_v14 = vpop.f32.mrb[4].mxu0 }
 0x22d   :  { %v1774_v15 = vpop.f32.mrb[5].mxu0 }
 0x22e   :  { %v596_v16 = vpop.f32.mrb[6].mxu0 }
 0x22f   :  { %v1775_v19 = vpop.f32.mrb[7].mxu0  ;;  %1829 = vmatpush3.bf16.msra.mxu1 %v2016_v18  ;;  %v1588_v18 = vld [vmem:[%s2959_s15] ss:$0 sm:$0xff]  ;;  %s1500_s15 = sshll.u32 %s2444_s14, 4  ;;  %s1501_s15 = int_to_ptr.vmem [resolvable:$true] %s1500_s15 }
 0x230   :  { %1830 = vmatprep.subr.bf16.mxu1 %v2442_v0  ;;  %s2362_s19 = scalar_lea.vmem %s1501_s15, 128  ;;  %p2367_p1 = scmp.lt.s32.totalorder %s1501_s15, %s1501_s15 }
 0x231   :  { %p2363_p0 = scmp.ne.s32.totalorder %s1501_s15, %s2362_s19  ;;  %p2368_p2 = scmp.lt.s32.totalorder %s2362_s19, %s2362_s19 }
 0x233   :  { %1831 = vmatpush3.bf16.msra.mxu1 %v2018_v22  ;;  %p2369_p3 = por %p2368_p2, %p2367_p1 }
 0x234   :  { %1856 = vmatprep.subr.bf16.mxu1 %v2442_v0 }
 0x235   :  { %p2370_p4 = pnand %p2369_p3, %p2363_p0 }
 0x24d   :  { %v2875_v24 = vpop.f32.mrb[8].mxu0 }
 0x24e   :  { %v1814_v25 = vpop.f32.mrb[9].mxu0 }
 0x24f   :  { %v814_v26 = vpop.f32.mrb[10].mxu0  ;;  %v1599_v25 = vld [vmem:[#allocation20] ss:$0 sm:$0xff] }
 0x250   :  { %v1815_v27 = vpop.f32.mrb[11].mxu0 }
 0x251   :  { %v1590_v27 = vld [vmem:[#allocation19] ss:$0 sm:$0xff] }
 0x26d   :  { %v2877_v28 = vpop.f32.mrb[12].mxu0 }
 0x26e   :  { %v1854_v29 = vpop.f32.mrb[13].mxu0 }
 0x26f   :  { %v1036_v30 = vpop.f32.mrb[14].mxu0 }
 0x270   :  { %v1855_v31 = vpop.f32.mrb[15].mxu0 }
 0x2e9   :  { %v681_v32 = vpop.f32.mrb[4].mxu1 }
 0x2ea   :  { %v682_v34 = vadd.f32 %v681_v32, %v593_v14  ;;  %v1794_v35 = vpop.f32.mrb[5].mxu1 }
 0x2eb   :  { %v684_v36 = vpop.f32.mrb[6].mxu1 }
 0x2ec   :  { %v694_v37 = vadd.f32 %v1553_v33, %v682_v34  ;;  %v1795_v38 = vpop.f32.mrb[7].mxu1 }
 0x2ee   :  { %v695_v39 = vmax.f32 %v694_v37, 0.0 }
 0x2f0   :  { %v696_v41 = vpack.c.bf16 %v695_v39, %v695_v39 }
 0x2f2   :  { %1833 = vmatmul.mubr.bf16.vlgmr.msra.gmra.mrb[8].mxu1 %v696_v41  ;;  %1893 = vmatmul.mubr.bf16.vlgmr.msra.gmra.mrb[16].mxu0 %v696_v41 }
 0x2f3   :  { %1857 = vmatpush3.bf16.msra.mxu1 %v2020_v40  ;;  %1872 = vmatprep.mubr.msk.bf16.mxu1 %vm2443_vm0, %v2442_v0 }
 0x2f4   :  { %1858 = vmatprep.subr.bf16.mxu1 %v2442_v0  ;;  %1932 = vmatprep.mubr.msk.bf16.mxu0 %vm2443_vm0, %v2442_v0 }
 0x2f5   :  { %1917 = vmatpush3.bf16.msra.mxu0 %v2036_v57 }
 0x2f6   :  { %1918 = vmatprep.subr.bf16.mxu0 %v2442_v0 }
 0x2f7   :  { %1859 = vmatpush3.bf16.msra.mxu1 %v2021_v42 }
 0x2f8   :  { %1860 = vmatprep.subr.bf16.mxu1 %v2442_v0 }
 0x2f9   :  { %1919 = vmatpush3.bf16.msra.mxu0 %v2037_v58 }
 0x2fa   :  { %1920 = vmatprep.subr.bf16.mxu0 %v2442_v0 }
 0x2fb   :  { %1861 = vmatpush3.bf16.msra.mxu1 %v2022_v43 }
 0x2fc   :  { %1862 = vmatprep.subr.bf16.mxu1 %v2442_v0 }
 0x2fd   :  { %1921 = vmatpush3.bf16.msra.mxu0 %v2038_v59 }
 0x2fe   :  { %1922 = vmatprep.subr.bf16.mxu0 %v2442_v0 }
 0x2ff   :  { %1863 = vmatpush3.bf16.msra.mxu1 %v2023_v44 }
 0x300   :  { %1864 = vmatprep.subr.bf16.mxu1 %v2442_v0 }
 0x301   :  { %1923 = vmatpush3.bf16.msra.mxu0 %v2039_v60 }
 0x302   :  { %1924 = vmatprep.subr.bf16.mxu0 %v2442_v0 }
 0x303   :  { %1865 = vmatpush3.bf16.msra.mxu1 %v2024_v45 }
 0x304   :  { %1866 = vmatprep.subr.bf16.mxu1 %v2442_v0 }
 0x305   :  { %1925 = vmatpush3.bf16.msra.mxu0 %v2040_v61 }
 0x306   :  { %1926 = vmatprep.subr.bf16.mxu0 %v2442_v0 }
 0x307   :  { %1867 = vmatpush3.bf16.msra.mxu1 %v2025_v46 }
 0x308   :  { %1868 = vmatprep.subr.bf16.mxu1 %v2442_v0 }
 0x309   :  { %1927 = vmatpush3.bf16.msra.mxu0 %v2041_v62 }
 0x30a   :  { %1928 = vmatprep.subr.bf16.mxu0 %v2442_v0 }
 0x30b   :  { %1869 = vmatpush3.bf16.msra.mxu1 %v2026_v47 }
 0x30c   :  { %1870 = vmatprep.subr.bf16.mxu1 %v2442_v0 }
 0x30f   :  { %1871 = vmatpush3.bf16.msra.mxu1 %v2027_v48 }
 0x310   :  { %1896 = vmatprep.subr.bf16.mxu1 %v2442_v0 }
 0x312   :  { %1873 = vmatmul.mubr.bf16.vlgmr.msra.gmra.mrb[12].mxu1 %v696_v41 }
 0x313   :  { %1897 = vmatpush3.bf16.msra.mxu1 %v2028_v49  ;;  %1912 = vmatprep.mubr.msk.bf16.mxu1 %vm2443_vm0, %v2442_v0 }
 0x314   :  { %1898 = vmatprep.subr.bf16.mxu1 %v2442_v0 }
 0x317   :  { %1899 = vmatpush3.bf16.msra.mxu1 %v2029_v50 }
 0x318   :  { %1900 = vmatprep.subr.bf16.mxu1 %v2442_v0 }
 0x31b   :  { %1901 = vmatpush3.bf16.msra.mxu1 %v2030_v51 }
 0x31c   :  { %1902 = vmatprep.subr.bf16.mxu1 %v2442_v0 }
 0x31f   :  { %1903 = vmatpush3.bf16.msra.mxu1 %v2031_v52 }
 0x320   :  { %1904 = vmatprep.subr.bf16.mxu1 %v2442_v0 }
 0x323   :  { %1905 = vmatpush3.bf16.msra.mxu1 %v2032_v53 }
 0x324   :  { %1906 = vmatprep.subr.bf16.mxu1 %v2442_v0 }
 0x327   :  { %1907 = vmatpush3.bf16.msra.mxu1 %v2033_v54 }
 0x328   :  { %1908 = vmatprep.subr.bf16.mxu1 %v2442_v0 }
 0x32b   :  { %1909 = vmatpush3.bf16.msra.mxu1 %v2034_v55 }
 0x32c   :  { %1910 = vmatprep.subr.bf16.mxu1 %v2442_v0 }
 0x32f   :  { %1911 = vmatpush3.bf16.msra.mxu1 %v2035_v56 }
 0x332   :  { %1913 = vmatmul.mubr.bf16.vlgmr.msra.gmra.mrb[16].mxu1 %v2805_v20  ;;  %v2042_v20 = vld [vmem:[#allocation22 + $0x30] sm:$0xff]  }
 0x333   :  { %1929 = vmatpush3.bf16.msra.mxu0 %v2042_v20 }
 0x334   :  { %1930 = vmatprep.subr.bf16.mxu0 %v2442_v0 }
 0x337   :  { %1931 = vmatpush3.bf16.msra.mxu0 %v2043_v63 }
 0x3c5   :  { %v899_v1 = vpop.f32.mrb[8].mxu1  ;;  %v1246_v2 = vpop.f32.mrb[16].mxu0 }
 0x3c6   :  { %v900_v3 = vadd.f32 %v899_v1, %v2875_v24  ;;  %v1834_v4 = vpop.f32.mrb[9].mxu1  ;;  %v1894_v5 = vpop.f32.mrb[17].mxu0  ;;  %v1247_v33 = vadd.f32 %v1590_v27, %v1246_v2 }
 0x3c7   :  { %v902_v6 = vpop.f32.mrb[10].mxu1  ;;  %v1249_v7 = vpop.f32.mrb[18].mxu0 }
 0x3c8   :  { %v1835_v8 = vpop.f32.mrb[11].mxu1  ;;  %v1895_v9 = vpop.f32.mrb[19].mxu0  ;;  %v912_v11 = vadd.f32 %v1570_v10, %v900_v3 }
 0x3ca   :  { %v1571_v15 = vmul.f32 -1.442695, %v912_v11 }
 0x3cc   :  { %2044 = vpow2.f32 %v1571_v15 }
 0x3d6   :  { %v2045_v22 = vpop.eup %2044 }
 0x3d7   :  { %v916_v23 = vadd.f32 1.0, %v2045_v22 }
 0x3e5   :  { %v1121_v12 = vpop.f32.mrb[12].mxu1 }
 0x3e6   :  { %v1122_v13 = vadd.f32 %v1121_v12, %v2877_v28  ;;  %v1874_v0 = vpop.f32.mrb[13].mxu1 }
 0x3e7   :  { %v1124_v14 = vpop.f32.mrb[14].mxu1 }
 0x3e8   :  { %v1875_v16 = vpop.f32.mrb[15].mxu1  ;;  %v1134_v19 = vadd.f32 %v1588_v18, %v1122_v13 }
 0x3ea   :  { %v1589_v21 = vmul.f32 -1.442695, %v1134_v19 }
 0x3ec   :  { %2046 = vpow2.f32 %v1589_v21 }
 0x3ed   :  { %2048 = vrcp.f32 %v916_v23 }
 0x3f6   :  { %v2047_v24 = vpop.eup %2046 }
 0x3f7   :  { %v1138_v26 = vadd.f32 1.0, %v2047_v24  ;;  %v2049_v31 = vpop.eup %2048 }
 0x3f9   :  { %2050 = vrcp.f32 %v1138_v26 }
 0x403   :  { %v2051_v37 = vpop.eup %2050 }
 0x404   :  { %v1366_v38 = vsub.f32 1.0, %v2051_v37  ;;  %v1368_v41 = vmul.f32 %v2051_v37, %v2796_v17 }
 0x405   :  { %v1357_v28 = vpop.f32.mrb[16].mxu1 }
 0x406   :  { %v1358_v29 = vadd.f32 %v1599_v25, %v1357_v28  ;;  %v1914_v30 = vpop.f32.mrb[17].mxu1 }
 0x407   :  { %v1360_v32 = vpop.f32.mrb[18].mxu1 }
 0x408   :  { %v1363_v34 = vmul.f32 %v2049_v31, %v1358_v29  ;;  %v1915_v35 = vpop.f32.mrb[19].mxu1 }
 0x40a   :  { %v1364_v36 = vadd.f32 %v1363_v34, %v1247_v33 }
 0x40c   :  { %2052 = vtanh.f32 %v1364_v36 }
 0x416   :  { %v2053_v39 = vpop.eup %2052 }
 0x417   :  { %v1367_v40 = vmul.f32 %v2053_v39, %v1366_v38 }
 0x419   :  { %v1369_v42 = vadd.f32 %v1368_v41, %v1367_v40 }
 0x41b   :  { %v1370_v43 = vpack.c.bf16 %v1369_v42, %v1369_v42  ;;  %1483 = vst [vmem:[#allocation26] sm:$0xff] %v1369_v42 }
 0x41d   :  { %1933 = vmatmul.mubr.bf16.vlgmr.msra.gmra.mrb[20].mxu0 %v1370_v43 }
 0x41e   :  { %2373 = shalt.err (!%p2370_p4)
}
 0x41f   :  { %s2986_s17 = sld [smem:[#allocation45_spill]] }
 0x425   :  { %s2374_s2 = scalar_lea.hbm %s2986_s17, 128 }
 0x426   :  { %p2375_p5 = scmp.ne.s32.totalorder %s2986_s17, %s2374_s2  ;;  %p2378_p6 = scmp.lt.u32.totalorder %s2374_s2, %s2986_s17 }
 0x428   :  { %p2380_p7 = pnand %p2378_p6, %p2375_p5 }
 0x42a   :  { %2383 = shalt.err (!%p2380_p7)
}
 0x42b   :  { %1503 = dma.vmem_to_hbm [thread:$0]  %s1501_s15, 128, %s2986_s17, [#allocation27]   ;;  %v1608_v17 = vld [vmem:[#allocation23] ss:$0 sm:$0xff] }
 0x42c   :  { %s2445_s10 = smov [#allocation25]  }
 0x42d   :  { %s1490_s1 = sshll.u32 %s2445_s10, 4  ;;  %s1491_s1 = int_to_ptr.vmem [resolvable:$true] %s1490_s1 }
 0x42e   :  { %s2384_s16 = scalar_lea.vmem %s1491_s1, 128  ;;  %p2389_p9 = scmp.lt.s32.totalorder %s1491_s1, %s1491_s1 }
 0x42f   :  { %p2385_p8 = scmp.ne.s32.totalorder %s1491_s1, %s2384_s16  ;;  %p2390_p10 = scmp.lt.s32.totalorder %s2384_s16, %s2384_s16 }
 0x431   :  { %p2391_p11 = por %p2390_p10, %p2389_p9 }
 0x433   :  { %p2392_p12 = pnand %p2391_p11, %p2385_p8 }
 0x4f0   :  { %v1476_v44 = vpop.f32.mrb[20].mxu0 }
 0x4f1   :  { %v1477_v45 = vadd.f32 %v1608_v17, %v1476_v44  ;;  %v1934_v46 = vpop.f32.mrb[21].mxu0 }
 0x4f2   :  { %v1479_v47 = vpop.f32.mrb[22].mxu0 }
 0x4f3   :  { %1482 = vst [vmem:[#allocation25] sm:$0xff] %v1477_v45  ;;  %v1935_v48 = vpop.f32.mrb[23].mxu0 }
 0x4f4   :  { %2395 = shalt.err (!%p2392_p12)
}
 0x4f5   :  { %s2987_s21 = sld [smem:[#allocation44_spill]] }
 0x4fb   :  { %s2396_s11 = scalar_lea.hbm %s2987_s21, 128 }
 0x4fc   :  { %p2397_p13 = scmp.ne.s32.totalorder %s2987_s21, %s2396_s11  ;;  %p2400_p0 = scmp.lt.u32.totalorder %s2396_s11, %s2987_s21 }
 0x4fe   :  { %p2402_p1 = pnand %p2400_p0, %p2397_p13 }
 0x500   :  { %2405 = shalt.err (!%p2402_p1)
}
 0x501   :  { %1493 = dma.vmem_to_hbm [thread:$0]  %s1491_s1, 128, %s2987_s21, [#allocation4]  }
 0x502   :  { %2422 = dma.done.wait [#allocation4], 128  }
 0x503   :  { %2423 = vsyncadd [#allocation4], 4294967168 }
 0x504   :  { %2424 = dma.done.wait [#allocation27], 128  }
 0x505   :  { %2425 = vsyncadd [#allocation27], 4294967168 }
 0x506   :  { %1510 = vsyncpa [#allocation3], 1 }
 0x507   :  { %1511 = vsyncpa [#allocation6], 1 }
 0x508   :  { %1512 = vsyncpa [#allocation9], 1 }
 0x509   :  { %1513 = vsyncpa [#allocation12], 1 }
 0x50a   :  { %1514 = vsyncpa [#allocation15], 1 }
 0x50b   :  { %1515 = vsyncpa [#allocation18], 1 }
 0x50c   :  { %1516 = vsyncpa [#allocation21], 1 }
 0x50d   :  { %1517 = vsyncpa [#allocation24], 1 }
 0x50e   :  { %1518 = vsyncpa [#allocation4], 1 }
 0x50f   :  { %1519 = vsyncpa [#allocation27], 1 }

</bundles_post_ra>
